<compile_context>
chip_gen: v5e
topology: v5e:2x2
jax: 0.10.0
libtpu: 0.0.40
codegen_flags: <defaults>
</compile_context>

<pallas_src>
import functools

import jax
import jax.numpy as jnp
from jax import lax
from jax.experimental import pallas as pl
from jax.experimental.pallas import tpu as pltpu

LN_EPS = 1e-5


def _layernorm(h, gamma, beta):
    mu = jnp.mean(h, axis=-1, keepdims=True)
    var = jnp.mean((h - mu) ** 2, axis=-1, keepdims=True)
    return (h - mu) * lax.rsqrt(var + LN_EPS) * gamma + beta


def encoder_kernel(xq_ref, xf_ref,
                   wq_ref, bq_ref, wk_ref, bk_ref, wv_ref, bv_ref,
                   wo_ref, bo_ref,
                   g1_ref, beta1_ref,
                   w1_ref, b1_ref, w2_ref, b2_ref,
                   g2_ref, beta2_ref,
                   o_ref,
                   k_sc, v_sc,
                   *, num_heads, kv_chunk):
    qi = pl.program_id(1)

    _, S, hd = k_sc.shape
    TQ = xq_ref.shape[1]
    D = xq_ref.shape[2]
    scale = 1.0 / (hd ** 0.5)
    n_kv = S // kv_chunk

    # ---- K / V projections: once per batch element, into VMEM scratch -----
    @pl.when(qi == 0)
    def _project_kv():
        xf_bf = xf_ref[0].astype(jnp.bfloat16)                      # (S, D)
        for h in range(num_heads):                                  # static
            k_sc[h] = (jnp.dot(xf_bf, wk_ref[h],
                               preferred_element_type=jnp.float32)
                       + bk_ref[h]).astype(jnp.bfloat16)
            v_sc[h] = (jnp.dot(xf_bf, wv_ref[h],
                               preferred_element_type=jnp.float32)
                       + bv_ref[h]).astype(jnp.bfloat16)

    xq_f32 = xq_ref[0].astype(jnp.float32)                          # (TQ, D)
    xq_bf = xq_f32.astype(jnp.bfloat16)

    # ---- multi-head self-attention (flash-style online softmax) -----------
    attn = jnp.zeros((TQ, D), jnp.float32)
    for h in range(num_heads):                                      # static
        q_h = (jnp.dot(xq_bf, wq_ref[h], preferred_element_type=jnp.float32)
               + bq_ref[h]) * scale
        q_bf = q_h.astype(jnp.bfloat16)                             # (TQ, hd)

        m = jnp.full((TQ, 1), -jnp.inf, jnp.float32)
        l = jnp.zeros((TQ, 1), jnp.float32)
        acc = jnp.zeros((TQ, hd), jnp.float32)
        for c in range(n_kv):                                       # static
            k_c = k_sc[h, c * kv_chunk:(c + 1) * kv_chunk, :]       # (TK, hd)
            v_c = v_sc[h, c * kv_chunk:(c + 1) * kv_chunk, :]       # (TK, hd)
            # scores: contract last dims (no explicit transpose)
            s = lax.dot_general(q_bf, k_c, (((1,), (1,)), ((), ())),
                                preferred_element_type=jnp.float32)  # (TQ,TK)
            m_new = jnp.maximum(m, jnp.max(s, axis=-1, keepdims=True))
            alpha = jnp.exp(m - m_new)
            p = jnp.exp(s - m_new)
            l = alpha * l + jnp.sum(p, axis=-1, keepdims=True)
            acc = alpha * acc + lax.dot_general(
                p.astype(jnp.bfloat16), v_c, (((1,), (0,)), ((), ())),
                preferred_element_type=jnp.float32)
            m = m_new
        o_h = acc * pl.reciprocal(l, approx=True)                   # (TQ, hd)
        # concat(heads) @ Wo == sum_h o_h @ Wo[h]
        attn = attn + jnp.dot(o_h.astype(jnp.bfloat16), wo_ref[h],
                              preferred_element_type=jnp.float32)
    attn = attn + bo_ref[...]

    # ---- residual + LayerNorm 1 (dropout == identity in eval) -------------
    h1 = _layernorm(xq_f32 + attn, g1_ref[...], beta1_ref[...])

    # ---- feed-forward: Linear -> ReLU -> Linear ----------------------------
    # TODO(synk): for very large D on v7x (64 MiB VMEM), tile w1/w2 over the
    # hidden dim with an inner k-loop instead of keeping both fully resident.
    f = jnp.dot(h1.astype(jnp.bfloat16), w1_ref[...],
                preferred_element_type=jnp.float32) + b1_ref[...]
    f = jnp.maximum(f, 0.0)
    f = jnp.dot(f.astype(jnp.bfloat16), w2_ref[...],
                preferred_element_type=jnp.float32) + b2_ref[...]

    # ---- residual + LayerNorm 2 --------------------------------------------
    out = _layernorm(h1 + f, g2_ref[...], beta2_ref[...])
    o_ref[0] = out.astype(o_ref.dtype)


def encoder_forward(x, params, num_heads, *, q_tile=None, kv_chunk=None,
                    vmem_limit_bytes=64 * 1024 * 1024):
    B, S, D = x.shape
    assert D % num_heads == 0, "context_dim must be divisible by num_heads"
    hd = D // num_heads
    Hf = params['w1'].shape[1]

    TQ = q_tile if q_tile is not None else min(S, 256)
    assert S % TQ == 0, "S must be a multiple of the query tile"
    TK = kv_chunk if kv_chunk is not None else min(S, 512)
    assert S % TK == 0, "S must be a multiple of the kv chunk"
    nq = S // TQ

    # ---- host-side weight packing (layout plumbing only) ------------------
    bf16, f32 = jnp.bfloat16, jnp.float32

    def split_cols_w(w):            # (D, D) -> (H, D, hd): per-head columns
        return jnp.swapaxes(w.reshape(D, num_heads, hd), 0, 1).astype(bf16)

    def split_cols_b(b):            # (1, D) -> (H, 1, hd)
        return jnp.swapaxes(b.reshape(1, num_heads, hd), 0, 1).astype(f32)

    wq = split_cols_w(params['wq']); bq = split_cols_b(params['bq'])
    wk = split_cols_w(params['wk']); bk = split_cols_b(params['bk'])
    wv = split_cols_w(params['wv']); bv = split_cols_b(params['bv'])
    wo = params['wo'].reshape(num_heads, hd, D).astype(bf16)  # per-head rows
    bo = params['bo'].astype(f32)
    g1 = params['g1'].astype(f32); beta1 = params['beta1'].astype(f32)
    w1 = params['w1'].astype(bf16); b1 = params['b1'].astype(f32)
    w2 = params['w2'].astype(bf16); b2 = params['b2'].astype(f32)
    g2 = params['g2'].astype(f32); beta2 = params['beta2'].astype(f32)

    consts = [wq, bq, wk, bk, wv, bv, wo, bo, g1, beta1,
              w1, b1, w2, b2, g2, beta2]

    in_specs = [
        pl.BlockSpec((1, TQ, D), lambda b, q: (b, q, 0)),   # query tile
        pl.BlockSpec((1, S, D), lambda b, q: (b, 0, 0)),    # full seq for K/V
    ]
    # Weights/LN params: constant block index -> stay resident across steps.
    for p in consts:
        in_specs.append(pl.BlockSpec(p.shape, lambda b, q, n=p.ndim: (0,) * n))

    flops = (2 * B * S * D * D * 4          # q/k/v/o projections
             + 4 * B * S * S * D            # scores + p@v over all heads
             + 4 * B * S * D * Hf)          # FFN
    transcendentals = B * num_heads * S * S  # softmax exp
    bytes_accessed = (3 * 4 * B * S * D
                      + sum(int(p.size) * p.dtype.itemsize for p in consts))

    kernel = functools.partial(encoder_kernel, num_heads=num_heads,
                               kv_chunk=TK)
    return pl.pallas_call(
        kernel,
        out_shape=jax.ShapeDtypeStruct((B, S, D), jnp.float32),
        grid_spec=pltpu.PrefetchScalarGridSpec(
            num_scalar_prefetch=0,
            grid=(B, nq),
            in_specs=in_specs,
            out_specs=pl.BlockSpec((1, TQ, D), lambda b, q: (b, q, 0)),
            scratch_shapes=[
                pltpu.VMEM((num_heads, S, hd), jnp.bfloat16),   # K scratch
                pltpu.VMEM((num_heads, S, hd), jnp.bfloat16),   # V scratch
            ],
        ),
        compiler_params=pltpu.CompilerParams(
            # K/V scratch is filled at q-tile 0 and reused -> qi is "arbitrary"
            dimension_semantics=("parallel", "arbitrary"),
            vmem_limit_bytes=vmem_limit_bytes,
        ),
        cost_estimate=pl.CostEstimate(
            flops=int(flops),
            transcendentals=int(transcendentals),
            bytes_accessed=int(bytes_accessed),
        ),
    )(x, x, *consts)


def encoder_ref(x, params, num_heads):
    """Pure-JAX reference: f32 math, weights rounded to bf16 like the kernel."""
    B, S, D = x.shape
    hd = D // num_heads

    def wcast(w):  # mimic bf16 weight storage used by the kernel
        return w.astype(jnp.bfloat16).astype(jnp.float32)

    q = x @ wcast(params['wq']) + params['bq']
    k = x @ wcast(params['wk']) + params['bk']
    v = x @ wcast(params['wv']) + params['bv']
    qh = q.reshape(B, S, num_heads, hd).transpose(0, 2, 1, 3)
    kh = k.reshape(B, S, num_heads, hd).transpose(0, 2, 1, 3)
    vh = v.reshape(B, S, num_heads, hd).transpose(0, 2, 1, 3)
    s = jnp.einsum('bhqd,bhkd->bhqk', qh, kh) / jnp.sqrt(hd)
    p = jax.nn.softmax(s, axis=-1)
    o = jnp.einsum('bhqk,bhkd->bhqd', p, vh).transpose(0, 2, 1, 3).reshape(B, S, D)
    attn = o @ wcast(params['wo']) + params['bo']

    def ln(h, g, b):
        mu = jnp.mean(h, axis=-1, keepdims=True)
        var = jnp.mean((h - mu) ** 2, axis=-1, keepdims=True)
        return (h - mu) / jnp.sqrt(var + LN_EPS) * g + b

    h1 = ln(x + attn, params['g1'], params['beta1'])
    f = jnp.maximum(h1 @ wcast(params['w1']) + params['b1'], 0.0)
    f = f @ wcast(params['w2']) + params['b2']
    return ln(h1 + f, params['g2'], params['beta2'])


def init_params(key, context_dim, compression_factor):
    D = context_dim
    H = D * compression_factor
    ks = jax.random.split(key, 8)
    scale = 0.02

    def w(k, shape):
        return (scale * jax.random.normal(k, shape)).astype(jnp.float32)

    params = {
        'wq': w(ks[0], (D, D)), 'bq': w(ks[1], (1, D)),
        'wk': w(ks[2], (D, D)), 'bk': w(ks[3], (1, D)),
        'wv': w(ks[4], (D, D)), 'bv': w(ks[5], (1, D)),
        'wo': w(ks[6], (D, D)), 'bo': jnp.zeros((1, D), jnp.float32),
        'g1': jnp.ones((1, D), jnp.float32), 'beta1': jnp.zeros((1, D), jnp.float32),
        'w1': w(ks[7], (D, H)), 'b1': jnp.full((1, H), 0.01, jnp.float32),
        'w2': w(jax.random.fold_in(key, 99), (H, D)),
        'b2': jnp.full((1, D), -0.01, jnp.float32),
        'g2': jnp.full((1, D), 1.1, jnp.float32),
        'beta2': jnp.full((1, D), 0.05, jnp.float32),
    }
    return params


if __name__ == "__main__":
    B, S, D = 2, 8, 32
    num_heads = 4
    compression_factor = 2

    key = jax.random.PRNGKey(0)
    kx, kp = jax.random.split(key)
    x = jax.random.normal(kx, (B, S, D), dtype=jnp.float32)
    params = init_params(kp, D, compression_factor)

    out = encoder_forward(x, params, num_heads)
    out = jax.block_until_ready(out)

    ref = encoder_ref(x, params, num_heads)
    assert out.shape == (B, S, D)
    err = jnp.max(jnp.abs(out - ref))
    assert jnp.allclose(out, ref, rtol=5e-2, atol=5e-2), f"max err {err}"

    print("KERNEL_OK")
</pallas_src>

<mosaic_0001>
module attributes {stable_mosaic.version = 11 : i64} {
  func.func @encoder_kernel(%arg0: i32, %arg1: i32, %arg2: memref<1x8x32xf32, #tpu.memory_space<vmem>>, %arg3: memref<1x8x32xf32, #tpu.memory_space<vmem>>, %arg4: memref<4x32x8xbf16, #tpu.memory_space<vmem>>, %arg5: memref<4x1x8xf32, #tpu.memory_space<vmem>>, %arg6: memref<4x32x8xbf16, #tpu.memory_space<vmem>>, %arg7: memref<4x1x8xf32, #tpu.memory_space<vmem>>, %arg8: memref<4x32x8xbf16, #tpu.memory_space<vmem>>, %arg9: memref<4x1x8xf32, #tpu.memory_space<vmem>>, %arg10: memref<4x8x32xbf16, #tpu.memory_space<vmem>>, %arg11: memref<1x32xf32, #tpu.memory_space<vmem>>, %arg12: memref<1x32xf32, #tpu.memory_space<vmem>>, %arg13: memref<1x32xf32, #tpu.memory_space<vmem>>, %arg14: memref<32x64xbf16, #tpu.memory_space<vmem>>, %arg15: memref<1x64xf32, #tpu.memory_space<vmem>>, %arg16: memref<64x32xbf16, #tpu.memory_space<vmem>>, %arg17: memref<1x32xf32, #tpu.memory_space<vmem>>, %arg18: memref<1x32xf32, #tpu.memory_space<vmem>>, %arg19: memref<1x32xf32, #tpu.memory_space<vmem>>, %arg20: memref<1x8x32xf32, #tpu.memory_space<vmem>>, %arg21: memref<4x8x8xbf16, #tpu.memory_space<vmem>>, %arg22: memref<4x8x8xbf16, #tpu.memory_space<vmem>>) attributes {dimension_semantics = [#tpu.dimension_semantics<parallel>, #tpu.dimension_semantics<arbitrary>], iteration_bounds = array<i64: 2, 1>, scalar_prefetch = 0 : i64, scratch_operands = 2 : i64, tpu.core_type = #tpu.core_type<tc>, window_params = [{transform_indices = @transform_0, window_bounds = array<i64: 1, 8, 32>}, {transform_indices = @transform_1, window_bounds = array<i64: 1, 8, 32>}, {pipeline_mode = #tpu.pipeline_mode<synchronous>, transform_indices = @transform_2, window_bounds = array<i64: 4, 32, 8>}, {pipeline_mode = #tpu.pipeline_mode<synchronous>, transform_indices = @transform_3, window_bounds = array<i64: 4, 1, 8>}, {pipeline_mode = #tpu.pipeline_mode<synchronous>, transform_indices = @transform_4, window_bounds = array<i64: 4, 32, 8>}, {pipeline_mode = #tpu.pipeline_mode<synchronous>, transform_indices = @transform_5, window_bounds = array<i64: 4, 1, 8>}, {pipeline_mode = #tpu.pipeline_mode<synchronous>, transform_indices = @transform_6, window_bounds = array<i64: 4, 32, 8>}, {pipeline_mode = #tpu.pipeline_mode<synchronous>, transform_indices = @transform_7, window_bounds = array<i64: 4, 1, 8>}, {pipeline_mode = #tpu.pipeline_mode<synchronous>, transform_indices = @transform_8, window_bounds = array<i64: 4, 8, 32>}, {pipeline_mode = #tpu.pipeline_mode<synchronous>, transform_indices = @transform_9, window_bounds = array<i64: 1, 32>}, {pipeline_mode = #tpu.pipeline_mode<synchronous>, transform_indices = @transform_10, window_bounds = array<i64: 1, 32>}, {pipeline_mode = #tpu.pipeline_mode<synchronous>, transform_indices = @transform_11, window_bounds = array<i64: 1, 32>}, {pipeline_mode = #tpu.pipeline_mode<synchronous>, transform_indices = @transform_12, window_bounds = array<i64: 32, 64>}, {pipeline_mode = #tpu.pipeline_mode<synchronous>, transform_indices = @transform_13, window_bounds = array<i64: 1, 64>}, {pipeline_mode = #tpu.pipeline_mode<synchronous>, transform_indices = @transform_14, window_bounds = array<i64: 64, 32>}, {pipeline_mode = #tpu.pipeline_mode<synchronous>, transform_indices = @transform_15, window_bounds = array<i64: 1, 32>}, {pipeline_mode = #tpu.pipeline_mode<synchronous>, transform_indices = @transform_16, window_bounds = array<i64: 1, 32>}, {pipeline_mode = #tpu.pipeline_mode<synchronous>, transform_indices = @transform_17, window_bounds = array<i64: 1, 32>}, {transform_indices = @transform_18, window_bounds = array<i64: 1, 8, 32>}]} {
    %c0_i32 = arith.constant 0 : i32
    %0 = arith.cmpi eq, %arg1, %c0_i32 : i32
    %1 = arith.extui %0 : i1 to i32
    %c0_i32_0 = arith.constant 0 : i32
    %2 = arith.cmpi ne, %1, %c0_i32_0 : i32
    scf.if %2 {
      %c0_134 = arith.constant 0 : index
      %c0_135 = arith.constant 0 : index
      %c0_136 = arith.constant 0 : index
      %249 = vector.load %arg3[%c0_134, %c0_135, %c0_136] : memref<1x8x32xf32, #tpu.memory_space<vmem>>, vector<1x8x32xf32>
      %250 = vector.shape_cast %249 : vector<1x8x32xf32> to vector<8x32xf32>
      %251 = arith.truncf %250 : vector<8x32xf32> to vector<8x32xbf16>
      %c0_137 = arith.constant 0 : index
      %c0_138 = arith.constant 0 : index
      %c0_139 = arith.constant 0 : index
      %252 = vector.load %arg6[%c0_137, %c0_138, %c0_139] : memref<4x32x8xbf16, #tpu.memory_space<vmem>>, vector<1x32x8xbf16>
      %253 = vector.shape_cast %252 : vector<1x32x8xbf16> to vector<32x8xbf16>
      %cst_140 = arith.constant dense<0.000000e+00> : vector<8x8xf32>
      %254 = tpu.matmul %251, %253, %cst_140 {dimension_numbers = #tpu.dot_dimension_numbers<[1], [0], [0], [1], [0, 0, 1, 1], [], []>} : vector<8x32xbf16>, vector<32x8xbf16>, vector<8x8xf32> -> vector<8x8xf32>
      %c0_141 = arith.constant 0 : index
      %c0_142 = arith.constant 0 : index
      %c0_143 = arith.constant 0 : index
      %255 = vector.load %arg7[%c0_141, %c0_142, %c0_143] : memref<4x1x8xf32, #tpu.memory_space<vmem>>, vector<1x1x8xf32>
      %256 = vector.shape_cast %255 : vector<1x1x8xf32> to vector<1x8xf32>
      %257 = vector.broadcast %256 : vector<1x8xf32> to vector<8x8xf32>
      %258 = arith.addf %254, %257 : vector<8x8xf32>
      %259 = arith.truncf %258 : vector<8x8xf32> to vector<8x8xbf16>
      %c0_144 = arith.constant 0 : index
      %c0_145 = arith.constant 0 : index
      %c0_146 = arith.constant 0 : index
      %260 = vector.load %arg21[%c0_144, %c0_145, %c0_146] : memref<4x8x8xbf16, #tpu.memory_space<vmem>>, vector<1x8x8xbf16>
      %261 = vector.shape_cast %260 : vector<1x8x8xbf16> to vector<8x8xbf16>
      %262 = vector.shape_cast %259 : vector<8x8xbf16> to vector<1x8x8xbf16>
      tpu.vector_store %arg21[%c0_144, %c0_145, %c0_146], %262 {strides = array<i32>} : memref<4x8x8xbf16, #tpu.memory_space<vmem>>, vector<1x8x8xbf16>,
      %c0_147 = arith.constant 0 : index
      %c0_148 = arith.constant 0 : index
      %c0_149 = arith.constant 0 : index
      %263 = vector.load %arg8[%c0_147, %c0_148, %c0_149] : memref<4x32x8xbf16, #tpu.memory_space<vmem>>, vector<1x32x8xbf16>
      %264 = vector.shape_cast %263 : vector<1x32x8xbf16> to vector<32x8xbf16>
      %cst_150 = arith.constant dense<0.000000e+00> : vector<8x8xf32>
      %265 = tpu.matmul %251, %264, %cst_150 {dimension_numbers = #tpu.dot_dimension_numbers<[1], [0], [0], [1], [0, 0, 1, 1], [], []>} : vector<8x32xbf16>, vector<32x8xbf16>, vector<8x8xf32> -> vector<8x8xf32>
      %c0_151 = arith.constant 0 : index
      %c0_152 = arith.constant 0 : index
      %c0_153 = arith.constant 0 : index
      %266 = vector.load %arg9[%c0_151, %c0_152, %c0_153] : memref<4x1x8xf32, #tpu.memory_space<vmem>>, vector<1x1x8xf32>
      %267 = vector.shape_cast %266 : vector<1x1x8xf32> to vector<1x8xf32>
      %268 = vector.broadcast %267 : vector<1x8xf32> to vector<8x8xf32>
      %269 = arith.addf %265, %268 : vector<8x8xf32>
      %270 = arith.truncf %269 : vector<8x8xf32> to vector<8x8xbf16>
      %c0_154 = arith.constant 0 : index
      %c0_155 = arith.constant 0 : index
      %c0_156 = arith.constant 0 : index
      %271 = vector.load %arg22[%c0_154, %c0_155, %c0_156] : memref<4x8x8xbf16, #tpu.memory_space<vmem>>, vector<1x8x8xbf16>
      %272 = vector.shape_cast %271 : vector<1x8x8xbf16> to vector<8x8xbf16>
      %273 = vector.shape_cast %270 : vector<8x8xbf16> to vector<1x8x8xbf16>
      tpu.vector_store %arg22[%c0_154, %c0_155, %c0_156], %273 {strides = array<i32>} : memref<4x8x8xbf16, #tpu.memory_space<vmem>>, vector<1x8x8xbf16>,
      %c1_157 = arith.constant 1 : index
      %c0_158 = arith.constant 0 : index
      %c0_159 = arith.constant 0 : index
      %274 = vector.load %arg6[%c1_157, %c0_158, %c0_159] : memref<4x32x8xbf16, #tpu.memory_space<vmem>>, vector<1x32x8xbf16>
      %275 = vector.shape_cast %274 : vector<1x32x8xbf16> to vector<32x8xbf16>
      %cst_160 = arith.constant dense<0.000000e+00> : vector<8x8xf32>
      %276 = tpu.matmul %251, %275, %cst_160 {dimension_numbers = #tpu.dot_dimension_numbers<[1], [0], [0], [1], [0, 0, 1, 1], [], []>} : vector<8x32xbf16>, vector<32x8xbf16>, vector<8x8xf32> -> vector<8x8xf32>
      %c1_161 = arith.constant 1 : index
      %c0_162 = arith.constant 0 : index
      %c0_163 = arith.constant 0 : index
      %277 = vector.load %arg7[%c1_161, %c0_162, %c0_163] : memref<4x1x8xf32, #tpu.memory_space<vmem>>, vector<1x1x8xf32>
      %278 = vector.shape_cast %277 : vector<1x1x8xf32> to vector<1x8xf32>
      %279 = vector.broadcast %278 : vector<1x8xf32> to vector<8x8xf32>
      %280 = arith.addf %276, %279 : vector<8x8xf32>
      %281 = arith.truncf %280 : vector<8x8xf32> to vector<8x8xbf16>
      %c1_164 = arith.constant 1 : index
      %c0_165 = arith.constant 0 : index
      %c0_166 = arith.constant 0 : index
      %282 = vector.load %arg21[%c1_164, %c0_165, %c0_166] : memref<4x8x8xbf16, #tpu.memory_space<vmem>>, vector<1x8x8xbf16>
      %283 = vector.shape_cast %282 : vector<1x8x8xbf16> to vector<8x8xbf16>
      %284 = vector.shape_cast %281 : vector<8x8xbf16> to vector<1x8x8xbf16>
      tpu.vector_store %arg21[%c1_164, %c0_165, %c0_166], %284 {strides = array<i32>} : memref<4x8x8xbf16, #tpu.memory_space<vmem>>, vector<1x8x8xbf16>,
      %c1_167 = arith.constant 1 : index
      %c0_168 = arith.constant 0 : index
      %c0_169 = arith.constant 0 : index
      %285 = vector.load %arg8[%c1_167, %c0_168, %c0_169] : memref<4x32x8xbf16, #tpu.memory_space<vmem>>, vector<1x32x8xbf16>
      %286 = vector.shape_cast %285 : vector<1x32x8xbf16> to vector<32x8xbf16>
      %cst_170 = arith.constant dense<0.000000e+00> : vector<8x8xf32>
      %287 = tpu.matmul %251, %286, %cst_170 {dimension_numbers = #tpu.dot_dimension_numbers<[1], [0], [0], [1], [0, 0, 1, 1], [], []>} : vector<8x32xbf16>, vector<32x8xbf16>, vector<8x8xf32> -> vector<8x8xf32>
      %c1_171 = arith.constant 1 : index
      %c0_172 = arith.constant 0 : index
      %c0_173 = arith.constant 0 : index
      %288 = vector.load %arg9[%c1_171, %c0_172, %c0_173] : memref<4x1x8xf32, #tpu.memory_space<vmem>>, vector<1x1x8xf32>
      %289 = vector.shape_cast %288 : vector<1x1x8xf32> to vector<1x8xf32>
      %290 = vector.broadcast %289 : vector<1x8xf32> to vector<8x8xf32>
      %291 = arith.addf %287, %290 : vector<8x8xf32>
      %292 = arith.truncf %291 : vector<8x8xf32> to vector<8x8xbf16>
      %c1_174 = arith.constant 1 : index
      %c0_175 = arith.constant 0 : index
      %c0_176 = arith.constant 0 : index
      %293 = vector.load %arg22[%c1_174, %c0_175, %c0_176] : memref<4x8x8xbf16, #tpu.memory_space<vmem>>, vector<1x8x8xbf16>
      %294 = vector.shape_cast %293 : vector<1x8x8xbf16> to vector<8x8xbf16>
      %295 = vector.shape_cast %292 : vector<8x8xbf16> to vector<1x8x8xbf16>
      tpu.vector_store %arg22[%c1_174, %c0_175, %c0_176], %295 {strides = array<i32>} : memref<4x8x8xbf16, #tpu.memory_space<vmem>>, vector<1x8x8xbf16>,
      %c2_177 = arith.constant 2 : index
      %c0_178 = arith.constant 0 : index
      %c0_179 = arith.constant 0 : index
      %296 = vector.load %arg6[%c2_177, %c0_178, %c0_179] : memref<4x32x8xbf16, #tpu.memory_space<vmem>>, vector<1x32x8xbf16>
      %297 = vector.shape_cast %296 : vector<1x32x8xbf16> to vector<32x8xbf16>
      %cst_180 = arith.constant dense<0.000000e+00> : vector<8x8xf32>
      %298 = tpu.matmul %251, %297, %cst_180 {dimension_numbers = #tpu.dot_dimension_numbers<[1], [0], [0], [1], [0, 0, 1, 1], [], []>} : vector<8x32xbf16>, vector<32x8xbf16>, vector<8x8xf32> -> vector<8x8xf32>
      %c2_181 = arith.constant 2 : index
      %c0_182 = arith.constant 0 : index
      %c0_183 = arith.constant 0 : index
      %299 = vector.load %arg7[%c2_181, %c0_182, %c0_183] : memref<4x1x8xf32, #tpu.memory_space<vmem>>, vector<1x1x8xf32>
      %300 = vector.shape_cast %299 : vector<1x1x8xf32> to vector<1x8xf32>
      %301 = vector.broadcast %300 : vector<1x8xf32> to vector<8x8xf32>
      %302 = arith.addf %298, %301 : vector<8x8xf32>
      %303 = arith.truncf %302 : vector<8x8xf32> to vector<8x8xbf16>
      %c2_184 = arith.constant 2 : index
      %c0_185 = arith.constant 0 : index
      %c0_186 = arith.constant 0 : index
      %304 = vector.load %arg21[%c2_184, %c0_185, %c0_186] : memref<4x8x8xbf16, #tpu.memory_space<vmem>>, vector<1x8x8xbf16>
      %305 = vector.shape_cast %304 : vector<1x8x8xbf16> to vector<8x8xbf16>
      %306 = vector.shape_cast %303 : vector<8x8xbf16> to vector<1x8x8xbf16>
      tpu.vector_store %arg21[%c2_184, %c0_185, %c0_186], %306 {strides = array<i32>} : memref<4x8x8xbf16, #tpu.memory_space<vmem>>, vector<1x8x8xbf16>,
      %c2_187 = arith.constant 2 : index
      %c0_188 = arith.constant 0 : index
      %c0_189 = arith.constant 0 : index
      %307 = vector.load %arg8[%c2_187, %c0_188, %c0_189] : memref<4x32x8xbf16, #tpu.memory_space<vmem>>, vector<1x32x8xbf16>
      %308 = vector.shape_cast %307 : vector<1x32x8xbf16> to vector<32x8xbf16>
      %cst_190 = arith.constant dense<0.000000e+00> : vector<8x8xf32>
      %309 = tpu.matmul %251, %308, %cst_190 {dimension_numbers = #tpu.dot_dimension_numbers<[1], [0], [0], [1], [0, 0, 1, 1], [], []>} : vector<8x32xbf16>, vector<32x8xbf16>, vector<8x8xf32> -> vector<8x8xf32>
      %c2_191 = arith.constant 2 : index
      %c0_192 = arith.constant 0 : index
      %c0_193 = arith.constant 0 : index
      %310 = vector.load %arg9[%c2_191, %c0_192, %c0_193] : memref<4x1x8xf32, #tpu.memory_space<vmem>>, vector<1x1x8xf32>
      %311 = vector.shape_cast %310 : vector<1x1x8xf32> to vector<1x8xf32>
      %312 = vector.broadcast %311 : vector<1x8xf32> to vector<8x8xf32>
      %313 = arith.addf %309, %312 : vector<8x8xf32>
      %314 = arith.truncf %313 : vector<8x8xf32> to vector<8x8xbf16>
      %c2_194 = arith.constant 2 : index
      %c0_195 = arith.constant 0 : index
      %c0_196 = arith.constant 0 : index
      %315 = vector.load %arg22[%c2_194, %c0_195, %c0_196] : memref<4x8x8xbf16, #tpu.memory_space<vmem>>, vector<1x8x8xbf16>
      %316 = vector.shape_cast %315 : vector<1x8x8xbf16> to vector<8x8xbf16>
      %317 = vector.shape_cast %314 : vector<8x8xbf16> to vector<1x8x8xbf16>
      tpu.vector_store %arg22[%c2_194, %c0_195, %c0_196], %317 {strides = array<i32>} : memref<4x8x8xbf16, #tpu.memory_space<vmem>>, vector<1x8x8xbf16>,
      %c3_197 = arith.constant 3 : index
      %c0_198 = arith.constant 0 : index
      %c0_199 = arith.constant 0 : index
      %318 = vector.load %arg6[%c3_197, %c0_198, %c0_199] : memref<4x32x8xbf16, #tpu.memory_space<vmem>>, vector<1x32x8xbf16>
      %319 = vector.shape_cast %318 : vector<1x32x8xbf16> to vector<32x8xbf16>
      %cst_200 = arith.constant dense<0.000000e+00> : vector<8x8xf32>
      %320 = tpu.matmul %251, %319, %cst_200 {dimension_numbers = #tpu.dot_dimension_numbers<[1], [0], [0], [1], [0, 0, 1, 1], [], []>} : vector<8x32xbf16>, vector<32x8xbf16>, vector<8x8xf32> -> vector<8x8xf32>
      %c3_201 = arith.constant 3 : index
      %c0_202 = arith.constant 0 : index
      %c0_203 = arith.constant 0 : index
      %321 = vector.load %arg7[%c3_201, %c0_202, %c0_203] : memref<4x1x8xf32, #tpu.memory_space<vmem>>, vector<1x1x8xf32>
      %322 = vector.shape_cast %321 : vector<1x1x8xf32> to vector<1x8xf32>
      %323 = vector.broadcast %322 : vector<1x8xf32> to vector<8x8xf32>
      %324 = arith.addf %320, %323 : vector<8x8xf32>
      %325 = arith.truncf %324 : vector<8x8xf32> to vector<8x8xbf16>
      %c3_204 = arith.constant 3 : index
      %c0_205 = arith.constant 0 : index
      %c0_206 = arith.constant 0 : index
      %326 = vector.load %arg21[%c3_204, %c0_205, %c0_206] : memref<4x8x8xbf16, #tpu.memory_space<vmem>>, vector<1x8x8xbf16>
      %327 = vector.shape_cast %326 : vector<1x8x8xbf16> to vector<8x8xbf16>
      %328 = vector.shape_cast %325 : vector<8x8xbf16> to vector<1x8x8xbf16>
      tpu.vector_store %arg21[%c3_204, %c0_205, %c0_206], %328 {strides = array<i32>} : memref<4x8x8xbf16, #tpu.memory_space<vmem>>, vector<1x8x8xbf16>,
      %c3_207 = arith.constant 3 : index
      %c0_208 = arith.constant 0 : index
      %c0_209 = arith.constant 0 : index
      %329 = vector.load %arg8[%c3_207, %c0_208, %c0_209] : memref<4x32x8xbf16, #tpu.memory_space<vmem>>, vector<1x32x8xbf16>
      %330 = vector.shape_cast %329 : vector<1x32x8xbf16> to vector<32x8xbf16>
      %cst_210 = arith.constant dense<0.000000e+00> : vector<8x8xf32>
      %331 = tpu.matmul %251, %330, %cst_210 {dimension_numbers = #tpu.dot_dimension_numbers<[1], [0], [0], [1], [0, 0, 1, 1], [], []>} : vector<8x32xbf16>, vector<32x8xbf16>, vector<8x8xf32> -> vector<8x8xf32>
      %c3_211 = arith.constant 3 : index
      %c0_212 = arith.constant 0 : index
      %c0_213 = arith.constant 0 : index
      %332 = vector.load %arg9[%c3_211, %c0_212, %c0_213] : memref<4x1x8xf32, #tpu.memory_space<vmem>>, vector<1x1x8xf32>
      %333 = vector.shape_cast %332 : vector<1x1x8xf32> to vector<1x8xf32>
      %334 = vector.broadcast %333 : vector<1x8xf32> to vector<8x8xf32>
      %335 = arith.addf %331, %334 : vector<8x8xf32>
      %336 = arith.truncf %335 : vector<8x8xf32> to vector<8x8xbf16>
      %c3_214 = arith.constant 3 : index
      %c0_215 = arith.constant 0 : index
      %c0_216 = arith.constant 0 : index
      %337 = vector.load %arg22[%c3_214, %c0_215, %c0_216] : memref<4x8x8xbf16, #tpu.memory_space<vmem>>, vector<1x8x8xbf16>
      %338 = vector.shape_cast %337 : vector<1x8x8xbf16> to vector<8x8xbf16>
      %339 = vector.shape_cast %336 : vector<8x8xbf16> to vector<1x8x8xbf16>
      tpu.vector_store %arg22[%c3_214, %c0_215, %c0_216], %339 {strides = array<i32>} : memref<4x8x8xbf16, #tpu.memory_space<vmem>>, vector<1x8x8xbf16>,
    } else {
    }
    %c0 = arith.constant 0 : index
    %c0_1 = arith.constant 0 : index
    %c0_2 = arith.constant 0 : index
    %3 = vector.load %arg2[%c0, %c0_1, %c0_2] : memref<1x8x32xf32, #tpu.memory_space<vmem>>, vector<1x8x32xf32>
    %4 = vector.shape_cast %3 : vector<1x8x32xf32> to vector<8x32xf32>
    %5 = arith.truncf %4 : vector<8x32xf32> to vector<8x32xbf16>
    %cst = arith.constant 0.000000e+00 : f32
    %6 = vector.broadcast %cst : f32 to vector<8x32xf32>
    %c0_3 = arith.constant 0 : index
    %c0_4 = arith.constant 0 : index
    %c0_5 = arith.constant 0 : index
    %7 = vector.load %arg4[%c0_3, %c0_4, %c0_5] : memref<4x32x8xbf16, #tpu.memory_space<vmem>>, vector<1x32x8xbf16>
    %8 = vector.shape_cast %7 : vector<1x32x8xbf16> to vector<32x8xbf16>
    %cst_6 = arith.constant dense<0.000000e+00> : vector<8x8xf32>
    %9 = tpu.matmul %5, %8, %cst_6 {dimension_numbers = #tpu.dot_dimension_numbers<[1], [0], [0], [1], [0, 0, 1, 1], [], []>} : vector<8x32xbf16>, vector<32x8xbf16>, vector<8x8xf32> -> vector<8x8xf32>
    %c0_7 = arith.constant 0 : index
    %c0_8 = arith.constant 0 : index
    %c0_9 = arith.constant 0 : index
    %10 = vector.load %arg5[%c0_7, %c0_8, %c0_9] : memref<4x1x8xf32, #tpu.memory_space<vmem>>, vector<1x1x8xf32>
    %11 = vector.shape_cast %10 : vector<1x1x8xf32> to vector<1x8xf32>
    %12 = vector.broadcast %11 : vector<1x8xf32> to vector<8x8xf32>
    %13 = arith.addf %9, %12 : vector<8x8xf32>
    %cst_10 = arith.constant 0.353553385 : f32
    %14 = vector.broadcast %cst_10 : f32 to vector<8x8xf32>
    %15 = arith.mulf %13, %14 : vector<8x8xf32>
    %16 = arith.truncf %15 : vector<8x8xf32> to vector<8x8xbf16>
    %cst_11 = arith.constant 0xFF800000 : f32
    %17 = vector.broadcast %cst_11 : f32 to vector<8x1xf32>
    %cst_12 = arith.constant 0.000000e+00 : f32
    %18 = vector.broadcast %cst_12 : f32 to vector<8x1xf32>
    %cst_13 = arith.constant 0.000000e+00 : f32
    %19 = vector.broadcast %cst_13 : f32 to vector<8x8xf32>
    %c0_14 = arith.constant 0 : index
    %c0_15 = arith.constant 0 : index
    %c0_16 = arith.constant 0 : index
    %20 = vector.load %arg21[%c0_14, %c0_15, %c0_16] : memref<4x8x8xbf16, #tpu.memory_space<vmem>>, vector<1x8x8xbf16>
    %21 = vector.shape_cast %20 : vector<1x8x8xbf16> to vector<8x8xbf16>
    %c0_17 = arith.constant 0 : index
    %c0_18 = arith.constant 0 : index
    %c0_19 = arith.constant 0 : index
    %22 = vector.load %arg22[%c0_17, %c0_18, %c0_19] : memref<4x8x8xbf16, #tpu.memory_space<vmem>>, vector<1x8x8xbf16>
    %23 = vector.shape_cast %22 : vector<1x8x8xbf16> to vector<8x8xbf16>
    %cst_20 = arith.constant dense<0.000000e+00> : vector<8x8xf32>
    %24 = tpu.matmul %16, %21, %cst_20 {dimension_numbers = #tpu.dot_dimension_numbers<[1], [1], [0], [0], [0, 0, 1, 0], [], []>} : vector<8x8xbf16>, vector<8x8xbf16>, vector<8x8xf32> -> vector<8x8xf32>
    %cst_21 = arith.constant dense<0xFF800000> : vector<8xf32>
    %25 = vector.multi_reduction <maximumf>, %24, %cst_21 [1] : vector<8x8xf32> to vector<8xf32>
    %26 = vector.shape_cast %25 : vector<8xf32> to vector<8x1xf32>
    %27 = arith.maximumf %17, %26 : vector<8x1xf32>
    %28 = arith.subf %17, %27 : vector<8x1xf32>
    %29 = math.exp %28 : vector<8x1xf32>
    %30 = vector.broadcast %27 : vector<8x1xf32> to vector<8x8xf32>
    %31 = arith.subf %24, %30 : vector<8x8xf32>
    %32 = math.exp %31 : vector<8x8xf32>
    %33 = arith.mulf %29, %18 : vector<8x1xf32>
    %cst_22 = arith.constant dense<0.000000e+00> : vector<8xf32>
    %34 = vector.multi_reduction <add>, %32, %cst_22 [1] : vector<8x8xf32> to vector<8xf32>
    %35 = vector.shape_cast %34 : vector<8xf32> to vector<8x1xf32>
    %36 = arith.addf %33, %35 : vector<8x1xf32>
    %37 = vector.broadcast %29 : vector<8x1xf32> to vector<8x8xf32>
    %38 = arith.mulf %37, %19 : vector<8x8xf32>
    %39 = arith.truncf %32 : vector<8x8xf32> to vector<8x8xbf16>
    %cst_23 = arith.constant dense<0.000000e+00> : vector<8x8xf32>
    %40 = tpu.matmul %39, %23, %cst_23 {dimension_numbers = #tpu.dot_dimension_numbers<[1], [0], [0], [1], [0, 0, 1, 1], [], []>} : vector<8x8xbf16>, vector<8x8xbf16>, vector<8x8xf32> -> vector<8x8xf32>
    %41 = arith.addf %38, %40 : vector<8x8xf32>
    %42 = tpu.reciprocal %36 {approx = true} : vector<8x1xf32> -> vector<8x1xf32>
    %43 = vector.broadcast %42 : vector<8x1xf32> to vector<8x8xf32>
    %44 = arith.mulf %41, %43 : vector<8x8xf32>
    %45 = arith.truncf %44 : vector<8x8xf32> to vector<8x8xbf16>
    %c0_24 = arith.constant 0 : index
    %c0_25 = arith.constant 0 : index
    %c0_26 = arith.constant 0 : index
    %46 = vector.load %arg10[%c0_24, %c0_25, %c0_26] : memref<4x8x32xbf16, #tpu.memory_space<vmem>>, vector<1x8x32xbf16>
    %47 = vector.shape_cast %46 : vector<1x8x32xbf16> to vector<8x32xbf16>
    %cst_27 = arith.constant dense<0.000000e+00> : vector<8x32xf32>
    %48 = tpu.matmul %45, %47, %cst_27 {dimension_numbers = #tpu.dot_dimension_numbers<[1], [0], [0], [1], [0, 0, 1, 1], [], []>} : vector<8x8xbf16>, vector<8x32xbf16>, vector<8x32xf32> -> vector<8x32xf32>
    %49 = arith.addf %6, %48 : vector<8x32xf32>
    %c1 = arith.constant 1 : index
    %c0_28 = arith.constant 0 : index
    %c0_29 = arith.constant 0 : index
    %50 = vector.load %arg4[%c1, %c0_28, %c0_29] : memref<4x32x8xbf16, #tpu.memory_space<vmem>>, vector<1x32x8xbf16>
    %51 = vector.shape_cast %50 : vector<1x32x8xbf16> to vector<32x8xbf16>
    %cst_30 = arith.constant dense<0.000000e+00> : vector<8x8xf32>
    %52 = tpu.matmul %5, %51, %cst_30 {dimension_numbers = #tpu.dot_dimension_numbers<[1], [0], [0], [1], [0, 0, 1, 1], [], []>} : vector<8x32xbf16>, vector<32x8xbf16>, vector<8x8xf32> -> vector<8x8xf32>
    %c1_31 = arith.constant 1 : index
    %c0_32 = arith.constant 0 : index
    %c0_33 = arith.constant 0 : index
    %53 = vector.load %arg5[%c1_31, %c0_32, %c0_33] : memref<4x1x8xf32, #tpu.memory_space<vmem>>, vector<1x1x8xf32>
    %54 = vector.shape_cast %53 : vector<1x1x8xf32> to vector<1x8xf32>
    %55 = vector.broadcast %54 : vector<1x8xf32> to vector<8x8xf32>
    %56 = arith.addf %52, %55 : vector<8x8xf32>
    %cst_34 = arith.constant 0.353553385 : f32
    %57 = vector.broadcast %cst_34 : f32 to vector<8x8xf32>
    %58 = arith.mulf %56, %57 : vector<8x8xf32>
    %59 = arith.truncf %58 : vector<8x8xf32> to vector<8x8xbf16>
    %cst_35 = arith.constant 0xFF800000 : f32
    %60 = vector.broadcast %cst_35 : f32 to vector<8x1xf32>
    %cst_36 = arith.constant 0.000000e+00 : f32
    %61 = vector.broadcast %cst_36 : f32 to vector<8x1xf32>
    %cst_37 = arith.constant 0.000000e+00 : f32
    %62 = vector.broadcast %cst_37 : f32 to vector<8x8xf32>
    %c1_38 = arith.constant 1 : index
    %c0_39 = arith.constant 0 : index
    %c0_40 = arith.constant 0 : index
    %63 = vector.load %arg21[%c1_38, %c0_39, %c0_40] : memref<4x8x8xbf16, #tpu.memory_space<vmem>>, vector<1x8x8xbf16>
    %64 = vector.shape_cast %63 : vector<1x8x8xbf16> to vector<8x8xbf16>
    %c1_41 = arith.constant 1 : index
    %c0_42 = arith.constant 0 : index
    %c0_43 = arith.constant 0 : index
    %65 = vector.load %arg22[%c1_41, %c0_42, %c0_43] : memref<4x8x8xbf16, #tpu.memory_space<vmem>>, vector<1x8x8xbf16>
    %66 = vector.shape_cast %65 : vector<1x8x8xbf16> to vector<8x8xbf16>
    %cst_44 = arith.constant dense<0.000000e+00> : vector<8x8xf32>
    %67 = tpu.matmul %59, %64, %cst_44 {dimension_numbers = #tpu.dot_dimension_numbers<[1], [1], [0], [0], [0, 0, 1, 0], [], []>} : vector<8x8xbf16>, vector<8x8xbf16>, vector<8x8xf32> -> vector<8x8xf32>
    %cst_45 = arith.constant dense<0xFF800000> : vector<8xf32>
    %68 = vector.multi_reduction <maximumf>, %67, %cst_45 [1] : vector<8x8xf32> to vector<8xf32>
    %69 = vector.shape_cast %68 : vector<8xf32> to vector<8x1xf32>
    %70 = arith.maximumf %60, %69 : vector<8x1xf32>
    %71 = arith.subf %60, %70 : vector<8x1xf32>
    %72 = math.exp %71 : vector<8x1xf32>
    %73 = vector.broadcast %70 : vector<8x1xf32> to vector<8x8xf32>
    %74 = arith.subf %67, %73 : vector<8x8xf32>
    %75 = math.exp %74 : vector<8x8xf32>
    %76 = arith.mulf %72, %61 : vector<8x1xf32>
    %cst_46 = arith.constant dense<0.000000e+00> : vector<8xf32>
    %77 = vector.multi_reduction <add>, %75, %cst_46 [1] : vector<8x8xf32> to vector<8xf32>
    %78 = vector.shape_cast %77 : vector<8xf32> to vector<8x1xf32>
    %79 = arith.addf %76, %78 : vector<8x1xf32>
    %80 = vector.broadcast %72 : vector<8x1xf32> to vector<8x8xf32>
    %81 = arith.mulf %80, %62 : vector<8x8xf32>
    %82 = arith.truncf %75 : vector<8x8xf32> to vector<8x8xbf16>
    %cst_47 = arith.constant dense<0.000000e+00> : vector<8x8xf32>
    %83 = tpu.matmul %82, %66, %cst_47 {dimension_numbers = #tpu.dot_dimension_numbers<[1], [0], [0], [1], [0, 0, 1, 1], [], []>} : vector<8x8xbf16>, vector<8x8xbf16>, vector<8x8xf32> -> vector<8x8xf32>
    %84 = arith.addf %81, %83 : vector<8x8xf32>
    %85 = tpu.reciprocal %79 {approx = true} : vector<8x1xf32> -> vector<8x1xf32>
    %86 = vector.broadcast %85 : vector<8x1xf32> to vector<8x8xf32>
    %87 = arith.mulf %84, %86 : vector<8x8xf32>
    %88 = arith.truncf %87 : vector<8x8xf32> to vector<8x8xbf16>
    %c1_48 = arith.constant 1 : index
    %c0_49 = arith.constant 0 : index
    %c0_50 = arith.constant 0 : index
    %89 = vector.load %arg10[%c1_48, %c0_49, %c0_50] : memref<4x8x32xbf16, #tpu.memory_space<vmem>>, vector<1x8x32xbf16>
    %90 = vector.shape_cast %89 : vector<1x8x32xbf16> to vector<8x32xbf16>
    %cst_51 = arith.constant dense<0.000000e+00> : vector<8x32xf32>
    %91 = tpu.matmul %88, %90, %cst_51 {dimension_numbers = #tpu.dot_dimension_numbers<[1], [0], [0], [1], [0, 0, 1, 1], [], []>} : vector<8x8xbf16>, vector<8x32xbf16>, vector<8x32xf32> -> vector<8x32xf32>
    %92 = arith.addf %49, %91 : vector<8x32xf32>
    %c2 = arith.constant 2 : index
    %c0_52 = arith.constant 0 : index
    %c0_53 = arith.constant 0 : index
    %93 = vector.load %arg4[%c2, %c0_52, %c0_53] : memref<4x32x8xbf16, #tpu.memory_space<vmem>>, vector<1x32x8xbf16>
    %94 = vector.shape_cast %93 : vector<1x32x8xbf16> to vector<32x8xbf16>
    %cst_54 = arith.constant dense<0.000000e+00> : vector<8x8xf32>
    %95 = tpu.matmul %5, %94, %cst_54 {dimension_numbers = #tpu.dot_dimension_numbers<[1], [0], [0], [1], [0, 0, 1, 1], [], []>} : vector<8x32xbf16>, vector<32x8xbf16>, vector<8x8xf32> -> vector<8x8xf32>
    %c2_55 = arith.constant 2 : index
    %c0_56 = arith.constant 0 : index
    %c0_57 = arith.constant 0 : index
    %96 = vector.load %arg5[%c2_55, %c0_56, %c0_57] : memref<4x1x8xf32, #tpu.memory_space<vmem>>, vector<1x1x8xf32>
    %97 = vector.shape_cast %96 : vector<1x1x8xf32> to vector<1x8xf32>
    %98 = vector.broadcast %97 : vector<1x8xf32> to vector<8x8xf32>
    %99 = arith.addf %95, %98 : vector<8x8xf32>
    %cst_58 = arith.constant 0.353553385 : f32
    %100 = vector.broadcast %cst_58 : f32 to vector<8x8xf32>
    %101 = arith.mulf %99, %100 : vector<8x8xf32>
    %102 = arith.truncf %101 : vector<8x8xf32> to vector<8x8xbf16>
    %cst_59 = arith.constant 0xFF800000 : f32
    %103 = vector.broadcast %cst_59 : f32 to vector<8x1xf32>
    %cst_60 = arith.constant 0.000000e+00 : f32
    %104 = vector.broadcast %cst_60 : f32 to vector<8x1xf32>
    %cst_61 = arith.constant 0.000000e+00 : f32
    %105 = vector.broadcast %cst_61 : f32 to vector<8x8xf32>
    %c2_62 = arith.constant 2 : index
    %c0_63 = arith.constant 0 : index
    %c0_64 = arith.constant 0 : index
    %106 = vector.load %arg21[%c2_62, %c0_63, %c0_64] : memref<4x8x8xbf16, #tpu.memory_space<vmem>>, vector<1x8x8xbf16>
    %107 = vector.shape_cast %106 : vector<1x8x8xbf16> to vector<8x8xbf16>
    %c2_65 = arith.constant 2 : index
    %c0_66 = arith.constant 0 : index
    %c0_67 = arith.constant 0 : index
    %108 = vector.load %arg22[%c2_65, %c0_66, %c0_67] : memref<4x8x8xbf16, #tpu.memory_space<vmem>>, vector<1x8x8xbf16>
    %109 = vector.shape_cast %108 : vector<1x8x8xbf16> to vector<8x8xbf16>
    %cst_68 = arith.constant dense<0.000000e+00> : vector<8x8xf32>
    %110 = tpu.matmul %102, %107, %cst_68 {dimension_numbers = #tpu.dot_dimension_numbers<[1], [1], [0], [0], [0, 0, 1, 0], [], []>} : vector<8x8xbf16>, vector<8x8xbf16>, vector<8x8xf32> -> vector<8x8xf32>
    %cst_69 = arith.constant dense<0xFF800000> : vector<8xf32>
    %111 = vector.multi_reduction <maximumf>, %110, %cst_69 [1] : vector<8x8xf32> to vector<8xf32>
    %112 = vector.shape_cast %111 : vector<8xf32> to vector<8x1xf32>
    %113 = arith.maximumf %103, %112 : vector<8x1xf32>
    %114 = arith.subf %103, %113 : vector<8x1xf32>
    %115 = math.exp %114 : vector<8x1xf32>
    %116 = vector.broadcast %113 : vector<8x1xf32> to vector<8x8xf32>
    %117 = arith.subf %110, %116 : vector<8x8xf32>
    %118 = math.exp %117 : vector<8x8xf32>
    %119 = arith.mulf %115, %104 : vector<8x1xf32>
    %cst_70 = arith.constant dense<0.000000e+00> : vector<8xf32>
    %120 = vector.multi_reduction <add>, %118, %cst_70 [1] : vector<8x8xf32> to vector<8xf32>
    %121 = vector.shape_cast %120 : vector<8xf32> to vector<8x1xf32>
    %122 = arith.addf %119, %121 : vector<8x1xf32>
    %123 = vector.broadcast %115 : vector<8x1xf32> to vector<8x8xf32>
    %124 = arith.mulf %123, %105 : vector<8x8xf32>
    %125 = arith.truncf %118 : vector<8x8xf32> to vector<8x8xbf16>
    %cst_71 = arith.constant dense<0.000000e+00> : vector<8x8xf32>
    %126 = tpu.matmul %125, %109, %cst_71 {dimension_numbers = #tpu.dot_dimension_numbers<[1], [0], [0], [1], [0, 0, 1, 1], [], []>} : vector<8x8xbf16>, vector<8x8xbf16>, vector<8x8xf32> -> vector<8x8xf32>
    %127 = arith.addf %124, %126 : vector<8x8xf32>
    %128 = tpu.reciprocal %122 {approx = true} : vector<8x1xf32> -> vector<8x1xf32>
    %129 = vector.broadcast %128 : vector<8x1xf32> to vector<8x8xf32>
    %130 = arith.mulf %127, %129 : vector<8x8xf32>
    %131 = arith.truncf %130 : vector<8x8xf32> to vector<8x8xbf16>
    %c2_72 = arith.constant 2 : index
    %c0_73 = arith.constant 0 : index
    %c0_74 = arith.constant 0 : index
    %132 = vector.load %arg10[%c2_72, %c0_73, %c0_74] : memref<4x8x32xbf16, #tpu.memory_space<vmem>>, vector<1x8x32xbf16>
    %133 = vector.shape_cast %132 : vector<1x8x32xbf16> to vector<8x32xbf16>
    %cst_75 = arith.constant dense<0.000000e+00> : vector<8x32xf32>
    %134 = tpu.matmul %131, %133, %cst_75 {dimension_numbers = #tpu.dot_dimension_numbers<[1], [0], [0], [1], [0, 0, 1, 1], [], []>} : vector<8x8xbf16>, vector<8x32xbf16>, vector<8x32xf32> -> vector<8x32xf32>
    %135 = arith.addf %92, %134 : vector<8x32xf32>
    %c3 = arith.constant 3 : index
    %c0_76 = arith.constant 0 : index
    %c0_77 = arith.constant 0 : index
    %136 = vector.load %arg4[%c3, %c0_76, %c0_77] : memref<4x32x8xbf16, #tpu.memory_space<vmem>>, vector<1x32x8xbf16>
    %137 = vector.shape_cast %136 : vector<1x32x8xbf16> to vector<32x8xbf16>
    %cst_78 = arith.constant dense<0.000000e+00> : vector<8x8xf32>
    %138 = tpu.matmul %5, %137, %cst_78 {dimension_numbers = #tpu.dot_dimension_numbers<[1], [0], [0], [1], [0, 0, 1, 1], [], []>} : vector<8x32xbf16>, vector<32x8xbf16>, vector<8x8xf32> -> vector<8x8xf32>
    %c3_79 = arith.constant 3 : index
    %c0_80 = arith.constant 0 : index
    %c0_81 = arith.constant 0 : index
    %139 = vector.load %arg5[%c3_79, %c0_80, %c0_81] : memref<4x1x8xf32, #tpu.memory_space<vmem>>, vector<1x1x8xf32>
    %140 = vector.shape_cast %139 : vector<1x1x8xf32> to vector<1x8xf32>
    %141 = vector.broadcast %140 : vector<1x8xf32> to vector<8x8xf32>
    %142 = arith.addf %138, %141 : vector<8x8xf32>
    %cst_82 = arith.constant 0.353553385 : f32
    %143 = vector.broadcast %cst_82 : f32 to vector<8x8xf32>
    %144 = arith.mulf %142, %143 : vector<8x8xf32>
    %145 = arith.truncf %144 : vector<8x8xf32> to vector<8x8xbf16>
    %cst_83 = arith.constant 0xFF800000 : f32
    %146 = vector.broadcast %cst_83 : f32 to vector<8x1xf32>
    %cst_84 = arith.constant 0.000000e+00 : f32
    %147 = vector.broadcast %cst_84 : f32 to vector<8x1xf32>
    %cst_85 = arith.constant 0.000000e+00 : f32
    %148 = vector.broadcast %cst_85 : f32 to vector<8x8xf32>
    %c3_86 = arith.constant 3 : index
    %c0_87 = arith.constant 0 : index
    %c0_88 = arith.constant 0 : index
    %149 = vector.load %arg21[%c3_86, %c0_87, %c0_88] : memref<4x8x8xbf16, #tpu.memory_space<vmem>>, vector<1x8x8xbf16>
    %150 = vector.shape_cast %149 : vector<1x8x8xbf16> to vector<8x8xbf16>
    %c3_89 = arith.constant 3 : index
    %c0_90 = arith.constant 0 : index
    %c0_91 = arith.constant 0 : index
    %151 = vector.load %arg22[%c3_89, %c0_90, %c0_91] : memref<4x8x8xbf16, #tpu.memory_space<vmem>>, vector<1x8x8xbf16>
    %152 = vector.shape_cast %151 : vector<1x8x8xbf16> to vector<8x8xbf16>
    %cst_92 = arith.constant dense<0.000000e+00> : vector<8x8xf32>
    %153 = tpu.matmul %145, %150, %cst_92 {dimension_numbers = #tpu.dot_dimension_numbers<[1], [1], [0], [0], [0, 0, 1, 0], [], []>} : vector<8x8xbf16>, vector<8x8xbf16>, vector<8x8xf32> -> vector<8x8xf32>
    %cst_93 = arith.constant dense<0xFF800000> : vector<8xf32>
    %154 = vector.multi_reduction <maximumf>, %153, %cst_93 [1] : vector<8x8xf32> to vector<8xf32>
    %155 = vector.shape_cast %154 : vector<8xf32> to vector<8x1xf32>
    %156 = arith.maximumf %146, %155 : vector<8x1xf32>
    %157 = arith.subf %146, %156 : vector<8x1xf32>
    %158 = math.exp %157 : vector<8x1xf32>
    %159 = vector.broadcast %156 : vector<8x1xf32> to vector<8x8xf32>
    %160 = arith.subf %153, %159 : vector<8x8xf32>
    %161 = math.exp %160 : vector<8x8xf32>
    %162 = arith.mulf %158, %147 : vector<8x1xf32>
    %cst_94 = arith.constant dense<0.000000e+00> : vector<8xf32>
    %163 = vector.multi_reduction <add>, %161, %cst_94 [1] : vector<8x8xf32> to vector<8xf32>
    %164 = vector.shape_cast %163 : vector<8xf32> to vector<8x1xf32>
    %165 = arith.addf %162, %164 : vector<8x1xf32>
    %166 = vector.broadcast %158 : vector<8x1xf32> to vector<8x8xf32>
    %167 = arith.mulf %166, %148 : vector<8x8xf32>
    %168 = arith.truncf %161 : vector<8x8xf32> to vector<8x8xbf16>
    %cst_95 = arith.constant dense<0.000000e+00> : vector<8x8xf32>
    %169 = tpu.matmul %168, %152, %cst_95 {dimension_numbers = #tpu.dot_dimension_numbers<[1], [0], [0], [1], [0, 0, 1, 1], [], []>} : vector<8x8xbf16>, vector<8x8xbf16>, vector<8x8xf32> -> vector<8x8xf32>
    %170 = arith.addf %167, %169 : vector<8x8xf32>
    %171 = tpu.reciprocal %165 {approx = true} : vector<8x1xf32> -> vector<8x1xf32>
    %172 = vector.broadcast %171 : vector<8x1xf32> to vector<8x8xf32>
    %173 = arith.mulf %170, %172 : vector<8x8xf32>
    %174 = arith.truncf %173 : vector<8x8xf32> to vector<8x8xbf16>
    %c3_96 = arith.constant 3 : index
    %c0_97 = arith.constant 0 : index
    %c0_98 = arith.constant 0 : index
    %175 = vector.load %arg10[%c3_96, %c0_97, %c0_98] : memref<4x8x32xbf16, #tpu.memory_space<vmem>>, vector<1x8x32xbf16>
    %176 = vector.shape_cast %175 : vector<1x8x32xbf16> to vector<8x32xbf16>
    %cst_99 = arith.constant dense<0.000000e+00> : vector<8x32xf32>
    %177 = tpu.matmul %174, %176, %cst_99 {dimension_numbers = #tpu.dot_dimension_numbers<[1], [0], [0], [1], [0, 0, 1, 1], [], []>} : vector<8x8xbf16>, vector<8x32xbf16>, vector<8x32xf32> -> vector<8x32xf32>
    %178 = arith.addf %135, %177 : vector<8x32xf32>
    %c0_100 = arith.constant 0 : index
    %c0_101 = arith.constant 0 : index
    %179 = vector.load %arg11[%c0_100, %c0_101] : memref<1x32xf32, #tpu.memory_space<vmem>>, vector<1x32xf32>
    %180 = vector.broadcast %179 : vector<1x32xf32> to vector<8x32xf32>
    %181 = arith.addf %178, %180 : vector<8x32xf32>
    %182 = arith.addf %4, %181 : vector<8x32xf32>
    %c0_102 = arith.constant 0 : index
    %c0_103 = arith.constant 0 : index
    %183 = vector.load %arg12[%c0_102, %c0_103] : memref<1x32xf32, #tpu.memory_space<vmem>>, vector<1x32xf32>
    %c0_104 = arith.constant 0 : index
    %c0_105 = arith.constant 0 : index
    %184 = vector.load %arg13[%c0_104, %c0_105] : memref<1x32xf32, #tpu.memory_space<vmem>>, vector<1x32xf32>
    %cst_106 = arith.constant dense<0.000000e+00> : vector<8xf32>
    %185 = vector.multi_reduction <add>, %182, %cst_106 [1] : vector<8x32xf32> to vector<8xf32>
    %186 = vector.shape_cast %185 : vector<8xf32> to vector<8x1xf32>
    %cst_107 = arith.constant 3.200000e+01 : f32
    %187 = vector.broadcast %cst_107 : f32 to vector<8x1xf32>
    %188 = arith.divf %186, %187 : vector<8x1xf32>
    %189 = vector.broadcast %188 : vector<8x1xf32> to vector<8x32xf32>
    %190 = arith.subf %182, %189 : vector<8x32xf32>
    %191 = arith.mulf %190, %190 : vector<8x32xf32>
    %cst_108 = arith.constant dense<0.000000e+00> : vector<8xf32>
    %192 = vector.multi_reduction <add>, %191, %cst_108 [1] : vector<8x32xf32> to vector<8xf32>
    %193 = vector.shape_cast %192 : vector<8xf32> to vector<8x1xf32>
    %cst_109 = arith.constant 3.200000e+01 : f32
    %194 = vector.broadcast %cst_109 : f32 to vector<8x1xf32>
    %195 = arith.divf %193, %194 : vector<8x1xf32>
    %196 = vector.broadcast %188 : vector<8x1xf32> to vector<8x32xf32>
    %197 = arith.subf %182, %196 : vector<8x32xf32>
    %cst_110 = arith.constant 9.99999974E-6 : f32
    %198 = vector.broadcast %cst_110 : f32 to vector<8x1xf32>
    %199 = arith.addf %195, %198 : vector<8x1xf32>
    %200 = math.rsqrt %199 : vector<8x1xf32>
    %201 = vector.broadcast %200 : vector<8x1xf32> to vector<8x32xf32>
    %202 = arith.mulf %197, %201 : vector<8x32xf32>
    %203 = vector.broadcast %183 : vector<1x32xf32> to vector<8x32xf32>
    %204 = arith.mulf %202, %203 : vector<8x32xf32>
    %205 = vector.broadcast %184 : vector<1x32xf32> to vector<8x32xf32>
    %206 = arith.addf %204, %205 : vector<8x32xf32>
    %207 = arith.truncf %206 : vector<8x32xf32> to vector<8x32xbf16>
    %c0_111 = arith.constant 0 : index
    %c0_112 = arith.constant 0 : index
    %208 = vector.load %arg14[%c0_111, %c0_112] : memref<32x64xbf16, #tpu.memory_space<vmem>>, vector<32x64xbf16>
    %cst_113 = arith.constant dense<0.000000e+00> : vector<8x64xf32>
    %209 = tpu.matmul %207, %208, %cst_113 {dimension_numbers = #tpu.dot_dimension_numbers<[1], [0], [0], [1], [0, 0, 1, 1], [], []>} : vector<8x32xbf16>, vector<32x64xbf16>, vector<8x64xf32> -> vector<8x64xf32>
    %c0_114 = arith.constant 0 : index
    %c0_115 = arith.constant 0 : index
    %210 = vector.load %arg15[%c0_114, %c0_115] : memref<1x64xf32, #tpu.memory_space<vmem>>, vector<1x64xf32>
    %211 = vector.broadcast %210 : vector<1x64xf32> to vector<8x64xf32>
    %212 = arith.addf %209, %211 : vector<8x64xf32>
    %cst_116 = arith.constant 0.000000e+00 : f32
    %213 = vector.broadcast %cst_116 : f32 to vector<8x64xf32>
    %214 = arith.maximumf %212, %213 : vector<8x64xf32>
    %215 = arith.truncf %214 : vector<8x64xf32> to vector<8x64xbf16>
    %c0_117 = arith.constant 0 : index
    %c0_118 = arith.constant 0 : index
    %216 = vector.load %arg16[%c0_117, %c0_118] : memref<64x32xbf16, #tpu.memory_space<vmem>>, vector<64x32xbf16>
    %cst_119 = arith.constant dense<0.000000e+00> : vector<8x32xf32>
    %217 = tpu.matmul %215, %216, %cst_119 {dimension_numbers = #tpu.dot_dimension_numbers<[1], [0], [0], [1], [0, 0, 1, 1], [], []>} : vector<8x64xbf16>, vector<64x32xbf16>, vector<8x32xf32> -> vector<8x32xf32>
    %c0_120 = arith.constant 0 : index
    %c0_121 = arith.constant 0 : index
    %218 = vector.load %arg17[%c0_120, %c0_121] : memref<1x32xf32, #tpu.memory_space<vmem>>, vector<1x32xf32>
    %219 = vector.broadcast %218 : vector<1x32xf32> to vector<8x32xf32>
    %220 = arith.addf %217, %219 : vector<8x32xf32>
    %221 = arith.addf %206, %220 : vector<8x32xf32>
    %c0_122 = arith.constant 0 : index
    %c0_123 = arith.constant 0 : index
    %222 = vector.load %arg18[%c0_122, %c0_123] : memref<1x32xf32, #tpu.memory_space<vmem>>, vector<1x32xf32>
    %c0_124 = arith.constant 0 : index
    %c0_125 = arith.constant 0 : index
    %223 = vector.load %arg19[%c0_124, %c0_125] : memref<1x32xf32, #tpu.memory_space<vmem>>, vector<1x32xf32>
    %cst_126 = arith.constant dense<0.000000e+00> : vector<8xf32>
    %224 = vector.multi_reduction <add>, %221, %cst_126 [1] : vector<8x32xf32> to vector<8xf32>
    %225 = vector.shape_cast %224 : vector<8xf32> to vector<8x1xf32>
    %cst_127 = arith.constant 3.200000e+01 : f32
    %226 = vector.broadcast %cst_127 : f32 to vector<8x1xf32>
    %227 = arith.divf %225, %226 : vector<8x1xf32>
    %228 = vector.broadcast %227 : vector<8x1xf32> to vector<8x32xf32>
    %229 = arith.subf %221, %228 : vector<8x32xf32>
    %230 = arith.mulf %229, %229 : vector<8x32xf32>
    %cst_128 = arith.constant dense<0.000000e+00> : vector<8xf32>
    %231 = vector.multi_reduction <add>, %230, %cst_128 [1] : vector<8x32xf32> to vector<8xf32>
    %232 = vector.shape_cast %231 : vector<8xf32> to vector<8x1xf32>
    %cst_129 = arith.constant 3.200000e+01 : f32
    %233 = vector.broadcast %cst_129 : f32 to vector<8x1xf32>
    %234 = arith.divf %232, %233 : vector<8x1xf32>
    %235 = vector.broadcast %227 : vector<8x1xf32> to vector<8x32xf32>
    %236 = arith.subf %221, %235 : vector<8x32xf32>
    %cst_130 = arith.constant 9.99999974E-6 : f32
    %237 = vector.broadcast %cst_130 : f32 to vector<8x1xf32>
    %238 = arith.addf %234, %237 : vector<8x1xf32>
    %239 = math.rsqrt %238 : vector<8x1xf32>
    %240 = vector.broadcast %239 : vector<8x1xf32> to vector<8x32xf32>
    %241 = arith.mulf %236, %240 : vector<8x32xf32>
    %242 = vector.broadcast %222 : vector<1x32xf32> to vector<8x32xf32>
    %243 = arith.mulf %241, %242 : vector<8x32xf32>
    %244 = vector.broadcast %223 : vector<1x32xf32> to vector<8x32xf32>
    %245 = arith.addf %243, %244 : vector<8x32xf32>
    %c0_131 = arith.constant 0 : index
    %c0_132 = arith.constant 0 : index
    %c0_133 = arith.constant 0 : index
    %246 = vector.load %arg20[%c0_131, %c0_132, %c0_133] : memref<1x8x32xf32, #tpu.memory_space<vmem>>, vector<1x8x32xf32>
    %247 = vector.shape_cast %246 : vector<1x8x32xf32> to vector<8x32xf32>
    %248 = vector.shape_cast %245 : vector<8x32xf32> to vector<1x8x32xf32>
    tpu.vector_store %arg20[%c0_131, %c0_132, %c0_133], %248 {strides = array<i32>} : memref<1x8x32xf32, #tpu.memory_space<vmem>>, vector<1x8x32xf32>,
    return
  }
  func.func @transform_0(%arg0: i32, %arg1: i32) -> (i32, i32, i32) {
    %c0_i32 = arith.constant 0 : i32
    %c0_i32_0 = arith.constant 0 : i32
    return %arg0, %arg1, %c0_i32 : i32, i32, i32
  }
  func.func @transform_1(%arg0: i32, %arg1: i32) -> (i32, i32, i32) {
    %c0_i32 = arith.constant 0 : i32
    %c0_i32_0 = arith.constant 0 : i32
    %c0_i32_1 = arith.constant 0 : i32
    return %arg0, %c0_i32, %c0_i32_0 : i32, i32, i32
  }
  func.func @transform_2(%arg0: i32, %arg1: i32) -> (i32, i32, i32) {
    %c0_i32 = arith.constant 0 : i32
    %c0_i32_0 = arith.constant 0 : i32
    %c0_i32_1 = arith.constant 0 : i32
    %c0_i32_2 = arith.constant 0 : i32
    return %c0_i32, %c0_i32_0, %c0_i32_1 : i32, i32, i32
  }
  func.func @transform_3(%arg0: i32, %arg1: i32) -> (i32, i32, i32) {
    %c0_i32 = arith.constant 0 : i32
    %c0_i32_0 = arith.constant 0 : i32
    %c0_i32_1 = arith.constant 0 : i32
    %c0_i32_2 = arith.constant 0 : i32
    return %c0_i32, %c0_i32_0, %c0_i32_1 : i32, i32, i32
  }
  func.func @transform_4(%arg0: i32, %arg1: i32) -> (i32, i32, i32) {
    %c0_i32 = arith.constant 0 : i32
    %c0_i32_0 = arith.constant 0 : i32
    %c0_i32_1 = arith.constant 0 : i32
    %c0_i32_2 = arith.constant 0 : i32
    return %c0_i32, %c0_i32_0, %c0_i32_1 : i32, i32, i32
  }
  func.func @transform_5(%arg0: i32, %arg1: i32) -> (i32, i32, i32) {
    %c0_i32 = arith.constant 0 : i32
    %c0_i32_0 = arith.constant 0 : i32
    %c0_i32_1 = arith.constant 0 : i32
    %c0_i32_2 = arith.constant 0 : i32
    return %c0_i32, %c0_i32_0, %c0_i32_1 : i32, i32, i32
  }
  func.func @transform_6(%arg0: i32, %arg1: i32) -> (i32, i32, i32) {
    %c0_i32 = arith.constant 0 : i32
    %c0_i32_0 = arith.constant 0 : i32
    %c0_i32_1 = arith.constant 0 : i32
    %c0_i32_2 = arith.constant 0 : i32
    return %c0_i32, %c0_i32_0, %c0_i32_1 : i32, i32, i32
  }
  func.func @transform_7(%arg0: i32, %arg1: i32) -> (i32, i32, i32) {
    %c0_i32 = arith.constant 0 : i32
    %c0_i32_0 = arith.constant 0 : i32
    %c0_i32_1 = arith.constant 0 : i32
    %c0_i32_2 = arith.constant 0 : i32
    return %c0_i32, %c0_i32_0, %c0_i32_1 : i32, i32, i32
  }
  func.func @transform_8(%arg0: i32, %arg1: i32) -> (i32, i32, i32) {
    %c0_i32 = arith.constant 0 : i32
    %c0_i32_0 = arith.constant 0 : i32
    %c0_i32_1 = arith.constant 0 : i32
    %c0_i32_2 = arith.constant 0 : i32
    return %c0_i32, %c0_i32_0, %c0_i32_1 : i32, i32, i32
  }
  func.func @transform_9(%arg0: i32, %arg1: i32) -> (i32, i32) {
    %c0_i32 = arith.constant 0 : i32
    %c0_i32_0 = arith.constant 0 : i32
    %c0_i32_1 = arith.constant 0 : i32
    return %c0_i32, %c0_i32_0 : i32, i32
  }
  func.func @transform_10(%arg0: i32, %arg1: i32) -> (i32, i32) {
    %c0_i32 = arith.constant 0 : i32
    %c0_i32_0 = arith.constant 0 : i32
    %c0_i32_1 = arith.constant 0 : i32
    return %c0_i32, %c0_i32_0 : i32, i32
  }
  func.func @transform_11(%arg0: i32, %arg1: i32) -> (i32, i32) {
    %c0_i32 = arith.constant 0 : i32
    %c0_i32_0 = arith.constant 0 : i32
    %c0_i32_1 = arith.constant 0 : i32
    return %c0_i32, %c0_i32_0 : i32, i32
  }
  func.func @transform_12(%arg0: i32, %arg1: i32) -> (i32, i32) {
    %c0_i32 = arith.constant 0 : i32
    %c0_i32_0 = arith.constant 0 : i32
    %c0_i32_1 = arith.constant 0 : i32
    return %c0_i32, %c0_i32_0 : i32, i32
  }
  func.func @transform_13(%arg0: i32, %arg1: i32) -> (i32, i32) {
    %c0_i32 = arith.constant 0 : i32
    %c0_i32_0 = arith.constant 0 : i32
    %c0_i32_1 = arith.constant 0 : i32
    return %c0_i32, %c0_i32_0 : i32, i32
  }
  func.func @transform_14(%arg0: i32, %arg1: i32) -> (i32, i32) {
    %c0_i32 = arith.constant 0 : i32
    %c0_i32_0 = arith.constant 0 : i32
    %c0_i32_1 = arith.constant 0 : i32
    return %c0_i32, %c0_i32_0 : i32, i32
  }
  func.func @transform_15(%arg0: i32, %arg1: i32) -> (i32, i32) {
    %c0_i32 = arith.constant 0 : i32
    %c0_i32_0 = arith.constant 0 : i32
    %c0_i32_1 = arith.constant 0 : i32
    return %c0_i32, %c0_i32_0 : i32, i32
  }
  func.func @transform_16(%arg0: i32, %arg1: i32) -> (i32, i32) {
    %c0_i32 = arith.constant 0 : i32
    %c0_i32_0 = arith.constant 0 : i32
    %c0_i32_1 = arith.constant 0 : i32
    return %c0_i32, %c0_i32_0 : i32, i32
  }
  func.func @transform_17(%arg0: i32, %arg1: i32) -> (i32, i32) {
    %c0_i32 = arith.constant 0 : i32
    %c0_i32_0 = arith.constant 0 : i32
    %c0_i32_1 = arith.constant 0 : i32
    return %c0_i32, %c0_i32_0 : i32, i32
  }
  func.func @transform_18(%arg0: i32, %arg1: i32) -> (i32, i32, i32) {
    %c0_i32 = arith.constant 0 : i32
    %c0_i32_0 = arith.constant 0 : i32
    return %arg0, %arg1, %c0_i32 : i32, i32, i32
  }
}

</mosaic_0001>

<bundles_post_ra>
// kernel: tpu_custom_call.1
= control target key start
LH: loop header
LB: loop body
LE: loop exit
PB: predicated region body
PF: predicated region fallthrough
CT: control target
= control target key end

     0   :  { %s2544_s0 = inlined_call_operand.vmem [shape: f32[2,8,32], index: 0, kind: input, shape index: {}]   ;;  %s2545_s1 = inlined_call_operand.vmem [shape: f32[2,8,32], index: 1, kind: input, shape index: {}]   ;;  %s2546_s2 = inlined_call_operand.vmem [shape: bf16[4,32,8], index: 2, kind: input, shape index: {}]   ;;  %s2547_s3 = inlined_call_operand.vmem [shape: f32[4,1,8], index: 3, kind: input, shape index: {}]   ;;  %s2548_s4 = inlined_call_operand.vmem [shape: bf16[4,32,8], index: 4, kind: input, shape index: {}]   ;;  %s2549_s5 = inlined_call_operand.vmem [shape: f32[4,1,8], index: 5, kind: input, shape index: {}]   ;;  %s2550_s6 = inlined_call_operand.vmem [shape: bf16[4,32,8], index: 6, kind: input, shape index: {}]   ;;  %s2551_s7 = inlined_call_operand.vmem [shape: f32[4,1,8], index: 7, kind: input, shape index: {}]   ;;  %s2552_s8 = inlined_call_operand.vmem [shape: bf16[4,8,32], index: 8, kind: input, shape index: {}]   ;;  %s2553_s9 = inlined_call_operand.vmem [shape: f32[1,32], index: 9, kind: input, shape index: {}]   ;;  %s2554_s10 = inlined_call_operand.vmem [shape: f32[1,32], index: 10, kind: input, shape index: {}]   ;;  %s2555_s11 = inlined_call_operand.vmem [shape: f32[1,32], index: 11, kind: input, shape index: {}]   ;;  %s2556_s12 = inlined_call_operand.vmem [shape: bf16[32,64], index: 12, kind: input, shape index: {}]   ;;  %s2557_s13 = inlined_call_operand.vmem [shape: f32[1,64], index: 13, kind: input, shape index: {}]   ;;  %s2558_s14 = inlined_call_operand.vmem [shape: bf16[64,32], index: 14, kind: input, shape index: {}]   ;;  %s2559_s15 = inlined_call_operand.vmem [shape: f32[1,32], index: 15, kind: input, shape index: {}]   ;;  %s2560_s16 = inlined_call_operand.vmem [shape: f32[1,32], index: 16, kind: input, shape index: {}]   ;;  %s2561_s17 = inlined_call_operand.vmem [shape: f32[1,32], index: 17, kind: input, shape index: {}]   ;;  %s2562_s18 = inlined_call_operand.hbm [shape: f32[2,8,32], index: 18, kind: output, shape index: {}]  }
   0x1   :  { %2573 = sst [smem:[#allocation15_spill]] %s2544_s0 }
   0x2   :  { %2574 = sst [smem:[#allocation16_spill]] %s2545_s1 }
   0x3   :  { %2575 = sst [smem:[#allocation17_spill]] %s2546_s2 }
   0x4   :  { %2576 = sst [smem:[#allocation18_spill]] %s2547_s3 }
   0x5   :  { %2577 = sst [smem:[#allocation19_spill]] %s2561_s17 }
   0x6   :  { %23 = vsyncpa [#allocation5], 0 }
   0x7   :  { %25 = vsyncpa [#allocation5 + $0x1], 0  ;;  %s2192_s27 = smov 0   ;;  %s2194_s28 = smov 0  }
   0x8   :  { %s2196_s29 = smov 0   ;;  %s2198_s30 = smov 0  }
   0x9   :  { %s2200_s0 = smov 0   ;;  %s2202_s19 = smov 0  }
   0xa LB: > { %2578 = sst [smem:[#allocation7_spill]] %s2074_s27  ;;  %s1675_s1 = sadd.s32 4294967295, %s2094_s19   ;;  %s2094_s19 = sphi %s2202_s19, %s31_s19   ;;  %s2090_s0 = sphi %s2200_s0, %s2603_s0   ;;  %s2086_s30 = sphi %s2198_s30, %s2599_s30   ;;  %s2082_s29 = sphi %s2196_s29, %s2598_s29   ;;  %s2078_s28 = sphi %s2194_s28, %s2602_s28   ;;  %s2074_s27 = sphi %s2192_s27, %s2601_s27  }
   0xb   : > { %2579 = sst [smem:[#allocation8_spill]] %s2082_s29  ;;  %s1676_s20 = sadd.s32 4294967294, %s2094_s19  }
   0xc   : > { %2580 = sst [smem:[#allocation9_spill]] %s2090_s0  ;;  %s43_s21 = sadd.s32 1, %s2090_s0 }
   0xd   : > { %2581 = sst [smem:[#allocation10_spill]] %s2094_s19  ;;  %s442_s22 = sadd.s32 1, %s2082_s29 }
   0xe   : > { %p45_p0 = scmp.ge.s32.totalorder %s43_s21, 2  ;;  %p452_p1 = scmp.ne.s32.totalorder %s2082_s29, %s2078_s28 }
   0xf   : > { %p453_p2 = scmp.eq.s32.totalorder %s1675_s1, 1  ;;  %p458_p3 = scmp.ne.s32.totalorder %s2078_s28, %s2074_s27 }
  0x10   : > { %s2605_s21 = smov (%p45_p0, %s43_s21), 0  ;;  %p459_p5 = scmp.eq.s32.totalorder %s1676_s20, 1 }
  0x11   : > { %2582 = sst [smem:[#allocation11_spill]] %s2605_s21  ;;  %p2232_p4 = por %p453_p2, %p452_p1 }
  0x12   : > { %s437_s23 = ssub.s32 %s2090_s0, %s2605_s21  ;;  %p1679_p6 = scmp.ge.s32.totalorder %s2094_s19, 1 }
  0x13   : > { %s2583_s2 = scalar_select %p2232_p4, 1, 0 }
  0x14   : > { %p440_p7 = scmp.eq.s32.totalorder %s437_s23, 0  ;;  %p2239_p8 = por %p459_p5, %p458_p3 }
  0x15   : > { %2584 = sst [smem:[#allocation12_spill]] %s2583_s2  ;;  %p542_p9 = scmp.lt.s32.totalorder %s2094_s19, 3 }
  0x16   : > { %s2585_s24 = scalar_select %p2239_p8, 1, 0 }
  0x17   : > { %s2245_s25 = scalar_select %p440_p7, %s2082_s29, %s442_s22  }
  0x18   : > { %2586 = sst [smem:[#allocation13_spill]] %s2585_s24  ;;  %p543_p10 = pnand %p1679_p6, %p542_p9 }
  0x19   : > { %2587 = sst [smem:[#allocation14_spill]] %s2245_s25  ;;  %p602_p11 = scmp.lt.s32.totalorder (!%p543_p10), %s2086_s30, 1 }
  0x1a   : > { %546 = sbr.rel (%p543_p10) target bundleno = 1832 (0x728), region = 92  ;;  %s2588_s24 = sld [smem:[#allocation16_spill]] (!%p543_p10) }
  0x1b   : > { %s2589_s21 = sld [smem:[#allocation17_spill]] (!%p543_p10)  ;;  %s599_s26 = sand.u32 (!%p543_p10), 1, %s2078_s28  }
  0x1c   : > { %s2591_s3 = sld [smem:[#allocation18_spill]] (!%p543_p10)  ;;  %s1680_s27 = sshll.u32 (!%p543_p10), %s599_s26, 3 }
  0x1d   : > { %s1878_s20 = sshll.u32 (!%p543_p10), %s2086_s30, 3  ;;  %s2593_s25 = sld [smem:[#allocation19_spill]] (!%p543_p10) }
  0x1e   : > { %s1576_s23 = scalar_lea.sflag (!%p543_p10), [#allocation5], %s599_s26 }
  0x1f   : > { %v1888_v0 = vld [vmem:[%s2550_s6 + $0x18] sm:$0xff]  ;;  %v1882_v2 = vld [vmem:[%s2548_s4 + $0x8] sm:$0xff]  ;;  %v1887_v3 = vld [vmem:[%s2550_s6 + $0x10] sm:$0xff]  ;;  %s2264_s1 = scalar_select %p602_p11, %s2086_s30, 1  ;;  %vm640_vm0 = vcmask 261120   ;;  %vm658_vm1 = vcmask 60416  }
  0x20   : > { %v1886_v1 = vld [vmem:[%s2548_s4 + $0x18] sm:$0xff]  ;;  %761 = vmatpush.bf16.msra.mxu3 %v1888_v0  ;;  %v1885_v4 = vld [vmem:[%s2548_s4 + $0x10] sm:$0xff]  ;;  %650 = vmatpush.bf16.msra.mxu0 %v1882_v2  ;;  %v1881_v6 = vld [vmem:[%s2548_s4] sm:$0xff]  ;;  %vm966_vm2 = vcmask 64512   ;;  %vm1004_vm3 = vcmask 1043456   ;;  %vm1524_vm8 = vcmask 523264  }
  0x21   : > { %723 = vmatpush.bf16.msra.mxu2 %v1886_v1  ;;  %v1896_v5 = vld [vmem:[%s2550_s6 + $0x38] sm:$0xff]  ;;  %s1681_s29 = sshll.u32 %s2264_s1, 3  ;;  %v1890_v7 = vld [vmem:[%s2548_s4 + $0x28] sm:$0xff]  ;;  %v1895_v8 = vld [vmem:[%s2550_s6 + $0x30] sm:$0xff] }
  0x22   : > { %s612_s19 = scalar_lea.vmem %s2588_s24, %s1681_s29  ;;  %v1900_v10 = vld [vmem:[%s2589_s21 + $0x18] sm:$0xff]  ;;  %v1889_v11 = vld [vmem:[%s2548_s4 + $0x20] sm:$0xff]  ;;  %v1898_v13 = vld [vmem:[%s2589_s21 + $0x8] sm:$0xff] }
  0x23   : > { %v618_v9 = vld [vmem:[%s612_s19] sm:$0xff]  ;;  %v1899_v14 = vld [vmem:[%s2589_s21 + $0x10] sm:$0xff]  ;;  %v1884_v15 = vld [vmem:[%s2550_s6 + $0x8] sm:$0xff]  ;;  %s2590_s19 = sld [smem:[#allocation15_spill]] }
  0x24   : > { %762 = vmatpush.bf16.msra.mxu3 %v1887_v3  ;;  %v2290_v12 = vpack.c.bf16 %v618_v9, %v618_v9  ;;  %651 = vmatpush.bf16.msra.mxu0 %v1881_v6  ;;  %v1897_v16 = vld [vmem:[%s2589_s21] sm:$0xff]  ;;  %v1892_v20 = vld [vmem:[%s2550_s6 + $0x28] sm:$0xff]  ;;  %v1894_v41 = vld [vmem:[%s2548_s4 + $0x38] sm:$0xff] }
  0x25   : > { %724 = vmatpush.bf16.msra.mxu2 %v1885_v4  ;;  %686 = vmatpush.bf16.msra.mxu1 %v1884_v15  ;;  %v1883_v17 = vld [vmem:[%s2550_s6] sm:$0xff]  ;;  %v1893_v44 = vld [vmem:[%s2548_s4 + $0x30] sm:$0xff] }
  0x26   : > { %v1891_v21 = vld [vmem:[%s2550_s6 + $0x20] sm:$0xff] }
  0x27   : > { %1728 = vmatmul.msk.bf16.vlgmr.msra.gmra.mxu3 %vm640_vm0, %v2290_v12  ;;  %1691 = vmatmul.msk.bf16.vlgmr.msra.gmra.mxu0 %vm640_vm0, %v2290_v12  ;;  %v1967_v22 = vld [vmem:[%s2549_s5] ss:$0 sm:$0xff]  ;;  %v1968_v25 = vld [vmem:[%s2551_s7 + $0x1] ss:$0 sm:$0xff]  ;;  %v1971_v39 = vld [vmem:[%s2549_s5 + $0x2] ss:$0 sm:$0xff] }
  0x28   : > { %913 = vmatpush.bf16.msrb.mxu3 %v1896_v5  ;;  %799 = vmatpush.bf16.msrb.mxu0 %v1890_v7  ;;  %v1969_v26 = vld [vmem:[%s2549_s5 + $0x1] ss:$0 sm:$0xff]  ;;  %v1974_v40 = vld [vmem:[%s2551_s7] ss:$0 sm:$0xff]  ;;  %v1970_v50 = vld [vmem:[%s2551_s7 + $0x3] ss:$0 sm:$0xff] }
  0x29   : > { %1714 = vmatmul.msk.bf16.vlgmr.msra.gmra.mxu2 %vm640_vm0, %v2290_v12  ;;  %687 = vmatpush.bf16.msra.mxu1 %v1883_v17  ;;  %s608_s2 = scalar_lea.vmem %s2590_s19, %s1681_s29  ;;  %v1973_v60 = vld [vmem:[%s2591_s3] ss:$0 sm:$0xff]  ;;  %v1972_v63 = vld [vmem:[%s2591_s3 + $0x1] ss:$0 sm:$0xff]  ;;  %v1904_v17 = vld [vmem:[%s2589_s21 + $0x38] sm:$0xff]  ;;  %s601_s29 = scalar_lea.vmem [#allocation4], %s1680_s27 }
  0x2a   : > { %v2324_v18 = vld [vmem:[%s608_s2] sm:$0xff]  ;;  %875 = vmatpush.bf16.msrb.mxu2 %v1894_v41  ;;  %s1587_s2 = scalar_lea.hbm %s2562_s18, %s1878_s20  ;;  %s1589_s30 = sshll.u32 %s601_s29, 4  ;;  %s1590_s30 = int_to_ptr.vmem [resolvable:$true] %s1589_s30 }
  0x2b   : > { %v2328_v19 = vpack.c.bf16 %v2324_v18, %v2324_v18  ;;  %s2036_s27 = scalar_lea.hbm %s2562_s18, 16 }
  0x2c   : > { %914 = vmatpush.bf16.msrb.mxu3 %v1895_v8  ;;  %800 = vmatpush.bf16.msrb.mxu0 %v1889_v11  ;;  %v1975_v11 = vld [vmem:[%s2551_s7 + $0x2] ss:$0 sm:$0xff] }
  0x2d   : > { %1700 = vmatmul.msk.bf16.vlgmr.msra.gmra.mxu1 %vm640_vm0, %v2290_v12 }
  0x2e   : > { %837 = vmatpush.bf16.msrb.mxu1 %v1892_v20  ;;  %876 = vmatpush.bf16.msrb.mxu2 %v1893_v44  ;;  %v1903_v20 = vld [vmem:[%s2589_s21 + $0x30] sm:$0xff] }
  0x30   : > { %1054 = vmatpush.bf16.msra.mxu3 %v1900_v10  ;;  %955 = vmatpush.bf16.msra.mxu0 %v1898_v13  ;;  %v1902_v10 = vld [vmem:[%s2589_s21 + $0x28] sm:$0xff] }
  0x32   : > { %838 = vmatpush.bf16.msrb.mxu1 %v1891_v21 }
  0x34   : > { %1055 = vmatpush.bf16.msra.mxu3 %v1899_v14  ;;  %956 = vmatpush.bf16.msra.mxu0 %v1897_v16  ;;  %v1901_v16 = vld [vmem:[%s2589_s21 + $0x20] sm:$0xff] }
  0x37   : > { %1784 = vmatmul.msk.bf16.vlgmr.msrb.gmra.mxu3 %vm640_vm0, %v2290_v12  ;;  %1742 = vmatmul.msk.bf16.vlgmr.msrb.gmra.mxu0 %vm640_vm0, %v2290_v12 }
  0x39   : > { %1770 = vmatmul.msk.bf16.vlgmr.msrb.gmra.mxu2 %vm640_vm0, %v2290_v12 }
  0x3d   : > { %1756 = vmatmul.msk.bf16.vlgmr.msrb.gmra.mxu1 %vm640_vm0, %v2290_v12 }
  0x47   : > { %1809 = vmatmul.msk.bf16.vlgmr.msra.gmra.mxu3 %vm640_vm0, %v2328_v19  ;;  %1793 = vmatmul.msk.bf16.vlgmr.msra.gmra.mxu0 %vm640_vm0, %v2328_v19 }
  0xa4   : > { %v653_v23 = vpop.f32.mrf.mxu0 }
  0xa5   : > { %v654_v24 = vadd.f32 %v1967_v22, %v653_v23 }
  0xa7   : > { %v657_v27 = vpack.c.bf16 %v654_v24, %v654_v24 }
  0xa9   : > { %659 = vst.msk [vmem:[#allocation2] sm:$0xf] %vm658_vm1, %v657_v27  ;;  %v1976_v27 = vld [vmem:[%s2549_s5 + $0x3] ss:$0 sm:$0xff] }
  0xaa   : > { %v764_v28 = vpop.f32.mrf.mxu3  ;;  %v689_v42 = vpop.f32.mrf.mxu1 }
  0xab   : > { %v765_v30 = vadd.f32 %v1968_v25, %v764_v28  ;;  %v690_v43 = vadd.f32 %v1974_v40, %v689_v42 }
  0xac   : > { %v726_v29 = vpop.f32.mrf.mxu2  ;;  %v655_v34 = vpop.f32.mrf.mxu0 }
  0xad   : > { %v727_v31 = vadd.f32 %v1969_v26, %v726_v29  ;;  %v768_v32 = vpack.c.bf16 %v765_v30, %v765_v30  ;;  %v693_v48 = vpack.c.bf16 %v690_v43, %v690_v43 }
  0xaf   : > { %v730_v33 = vpack.c.bf16 %v727_v31, %v727_v31  ;;  %770 = vst.msk [vmem:[#allocation3 + $0x4] sm:$0xf] %vm658_vm1, %v768_v32 }
  0xb0   : > { %v964_v35 = vld [vmem:[#allocation2] sm:$0xf]  ;;  %694 = vst.msk [vmem:[#allocation3] sm:$0xf] %vm658_vm1, %v693_v48 }
  0xb1   : > { %732 = vst.msk [vmem:[#allocation2 + $0x4] sm:$0xf] %vm658_vm1, %v730_v33  ;;  %v971_v38 = vsel %vm966_vm2, %v964_v35, 0  ;;  %v1977_v48 = vld [vmem:[%s2591_s3 + $0x2] ss:$0 sm:$0xff] }
  0xb2   : > { %v766_v36 = vpop.f32.mrf.mxu3  ;;  %980 = vmatpush.bf16.xpose.msra.mxu1 %v971_v38  ;;  %v691_v56 = vpop.f32.mrf.mxu1 }
  0xb4   : > { %v728_v37 = vpop.f32.mrf.mxu2  ;;  %v802_v45 = vpop.f32.mrf.mxu0 }
  0xb5   : > { %v803_v47 = vadd.f32 %v1971_v39, %v802_v45 }
  0xb6   : > { %v1066_v46 = vld [vmem:[#allocation3 + $0x4] sm:$0xf] }
  0xb7   : > { %v1105_v49 = vsel %vm1004_vm3, %v1066_v46, 0  ;;  %v806_v53 = vpack.c.bf16 %v803_v47, %v803_v47  ;;  %v965_v32 = vld [vmem:[#allocation3] sm:$0xf] }
  0xb8   : > { %v1064_v51 = vld [vmem:[#allocation2 + $0x4] sm:$0xf] }
  0xb9   : > { %v1071_v52 = vsel %vm966_vm2, %v1064_v51, 0  ;;  %808 = vst.msk [vmem:[#allocation2 + $0x8] sm:$0xf] %vm658_vm1, %v806_v53 }
  0xba   : > { %1114 = vmatpush.bf16.msrb.mxu1 %v1105_v49  ;;  %1080 = vmatpush.bf16.xpose.msrb.mxu0 %v1071_v52  ;;  %v916_v54 = vpop.f32.mrf.mxu3  ;;  %v840_v12 = vpop.f32.mrf.mxu1  ;;  %v1812_v49 = vld [vmem:[%s2552_s8 + $0x4] sm:$0xf] }
  0xbb   : > { %v917_v55 = vadd.f32 %v1970_v50, %v916_v54  ;;  %v841_v13 = vadd.f32 %v1975_v11, %v840_v12  ;;  %v1130_v50 = vsel %vm1004_vm3, %v1812_v49, 0 }
  0xbc   : > { %v804_v58 = vpop.f32.mrf.mxu0  ;;  %v878_v28 = vpop.f32.mrf.mxu2 }
  0xbd   : > { %v920_v57 = vpack.c.bf16 %v917_v55, %v917_v55  ;;  %v844_v14 = vpack.c.bf16 %v841_v13, %v841_v13  ;;  %v879_v29 = vadd.f32 %v1976_v27, %v878_v28  ;;  %v1978_v58 = vld [vmem:[%s2591_s3 + $0x3] ss:$0 sm:$0xff]  ;;  %s1591_s3 = sshll.u32 %s1587_s2, 4  ;;  %s1592_s3 = int_to_ptr.hbm [resolvable:$true] %s1591_s3 }
  0xbe   : > { %s2030_s0 = sshra.s32 %s1592_s3, 4  ;;  %s2031_s0 = int_to_ptr.hbm [resolvable:$true] %s2030_s0 }
  0xbf   : > { %922 = vst.msk [vmem:[#allocation3 + $0xc] sm:$0xf] %vm658_vm1, %v920_v57  ;;  %v882_v31 = vpack.c.bf16 %v879_v29, %v879_v29  ;;  %s2032_s20 = scalar_lea.hbm %s2031_s0, 8  ;;  %p2037_p1 = scmp.lt.s32.totalorder %s2031_s0, %s2562_s18 }
  0xc0   : > { %v1202_v0 = vld [vmem:[#allocation2 + $0x8] sm:$0xf]  ;;  %846 = vst.msk [vmem:[#allocation3 + $0x8] sm:$0xf] %vm658_vm1, %v844_v14  ;;  %p2033_p12 = scmp.ne.s32.totalorder %s2031_s0, %s2032_s20  ;;  %p2038_p2 = scmp.lt.s32.totalorder %s2036_s27, %s2032_s20 }
  0xc1   : > { %v1209_v4 = vsel %vm966_vm2, %v1202_v0, 0  ;;  %884 = vst.msk [vmem:[#allocation2 + $0xc] sm:$0xf] %vm658_vm1, %v882_v31 }
  0xc2   : > { %v918_v59 = vpop.f32.mrf.mxu3  ;;  %1192 = vmatpush.bf16.msra.mxu0 %v1902_v10  ;;  %v842_v15 = vpop.f32.mrf.mxu1  ;;  %p2034_p13 = pnand %p2033_p12, %p2232_p4  ;;  %p2039_p3 = por %p2038_p2, %p2037_p1 }
  0xc4   : > { %v958_v61 = vpop.f32.mrf.mxu0  ;;  %v880_v33 = vpop.f32.mrf.mxu2  ;;  %p2035_p0 = pneg %p2034_p13 }
  0xc5   : > { %v959_v62 = vadd.f32 %v1973_v60, %v958_v61 }
  0xc6   : > { %1193 = vmatpush.bf16.msra.mxu0 %v1901_v16  ;;  %p2040_p5 = pnand %p2039_p3, %p2035_p0 }
  0xc7   : > { %v962_v1 = vmul.f32 0.35355338, %v959_v62  ;;  %v1204_v51 = vld [vmem:[#allocation3 + $0x8] sm:$0xf] }
  0xc8   : > { %v1322_v42 = vld [vmem:[#allocation2 + $0xc] sm:$0xf]  ;;  %v1243_v55 = vsel %vm1004_vm3, %v1204_v51, 0 }
  0xc9   : > { %v963_v3 = vpack.c.bf16 %v962_v1, %v962_v1  ;;  %v1329_v47 = vsel %vm966_vm2, %v1322_v42, 0  ;;  %v1849_v51 = vld [vmem:[%s2552_s8 + $0xc] sm:$0xf] }
  0xca   : > { %v1057_v2 = vpop.f32.mrf.mxu3 }
  0xcb   : > { %v1058_v5 = vadd.f32 %v1972_v63, %v1057_v2  ;;  %1794 = vmatmul.msk.bf16.vlgmr.msra.gmra.mxu1 %vm966_vm2, %v963_v3 }
  0xcc   : > { %1218 = vmatpush.bf16.xpose.msra.mxu1 %v1209_v4  ;;  %v960_v7 = vpop.f32.mrf.mxu0 }
  0xcd   : > { %v1061_v6 = vmul.f32 0.35355338, %v1058_v5 }
  0xcf   : > { %v1062_v8 = vpack.c.bf16 %v1061_v6, %v1061_v6 }
  0xd1   : > { %1810 = vmatmul.msk.bf16.vlgmr.msrb.gmra.mxu0 %vm966_vm2, %v1062_v8  ;;  %v1324_v8 = vld [vmem:[#allocation3 + $0xc] sm:$0xf] }
  0xd2   : > { %v1059_v9 = vpop.f32.mrf.mxu3  ;;  %1312 = vmatpush.bf16.msrb.mxu0 %v1904_v17  ;;  %v1363_v10 = vsel %vm1004_vm3, %v1324_v8, 0 }
  0xd6   : > { %1313 = vmatpush.bf16.msrb.mxu0 %v1903_v20 }
  0xe1   : > { %1828 = vmatmul.msk.bf16.vlgmr.msra.gmra.mxu0 %vm640_vm0, %v2328_v19 }
  0xf1   : > { %1846 = vmatmul.msk.bf16.vlgmr.msrb.gmra.mxu0 %vm640_vm0, %v2328_v19  ;;  %v1006_v19 = vsel %vm1004_vm3, %v965_v32, 0 }
  0xf2   : > { %1015 = vmatpush.bf16.msra.mxu2 %v1006_v19 }
  0xf6   : > { %1139 = vmatpush.bf16.msrb.mxu2 %v1130_v50 }
 0x148   : > { %v982_v21 = vpop.f32.mrf.mxu1 }
 0x149   : > { %v986_v25 = vsel %vm966_vm2, %v982_v21, -inf }
 0x14e   : > { %v1082_v22 = vpop.f32.mrf.mxu0 }
 0x14f   : > { %v1086_v23 = vsel %vm966_vm2, %v1082_v22, -inf }
 0x150   : > { %1087 = vmax.xlane.f32.xlu0 %v1086_v23  ;;  %v984_v24 = vpop.f32.mrf.mxu1 }
 0x156   : > { %v1084_v26 = vpop.f32.mrf.mxu0 }
 0x158   : > { %987 = vmax.xlane.f32.xlu0 %v986_v25  ;;  %v1025_v25 = vld [vmem:[%s2552_s8] sm:$0xf] }
 0x159   : > { %v1149_v27 = vsel %vm1004_vm3, %v1025_v25, 0 }
 0x15a   : > { %1158 = vmatpush.bf16.msrb.mxu3 %v1149_v27  ;;  %v2096_v27 = vmov 32.0  }
 0x15e   : > { %v1195_v30 = vpop.f32.mrf.mxu0 }
 0x15f   : > { %v1196_v52 = vadd.f32 %v1977_v48, %v1195_v30  ;;  %v1831_v48 = vld [vmem:[%s2552_s8 + $0x8] sm:$0xf] }
 0x160   : > { %v1268_v49 = vsel %vm1004_vm3, %v1831_v48, 0 }
 0x161   : > { %v1199_v56 = vmul.f32 0.35355338, %v1196_v52  ;;  %1277 = vmatpush.bf16.msra.mxu3 %v1268_v49  ;;  %v1388_v52 = vsel %vm1004_vm3, %v1849_v51, 0  ;;  %v1980_v51 = vld [vmem:[%s2554_s10] ss:$0 sm:$0xff] }
 0x163   : > { %v1200_v57 = vpack.c.bf16 %v1199_v56, %v1199_v56 }
 0x166   : > { %v1197_v34 = vpop.f32.mrf.mxu0 }
 0x16e   : > { %v1315_v36 = vpop.f32.mrf.mxu0 }
 0x16f   : > { %v1316_v59 = vadd.f32 %v1978_v58, %v1315_v36 }
 0x171   : > { %v1319_v60 = vmul.f32 0.35355338, %v1316_v59 }
 0x173   : > { %v1320_v61 = vpack.c.bf16 %v1319_v60, %v1319_v60 }
 0x176   : > { %v1317_v40 = vpop.f32.mrf.mxu0 }
 0x1c3   : > { %v1088_v35 = vpop.xlane.xlu0 %1087 }
 0x1c4   : > { %v1092_v37 = vsub.f32 %v1082_v22, %v1088_v35  ;;  %v1089_v62 = vsub.f32 -inf, %v1088_v35 }
 0x1c6   : > { %v1093_v38 = vmul.f32 1.442695, %v1092_v37  ;;  %v1090_v63 = vmul.f32 1.442695, %v1089_v62 }
 0x1c8   : > { %1986 = vpow2.f32 %v1093_v38 }
 0x1cb   : > { %v2413_v39 = vpop.xlane.xlu0 %987 }
 0x1cc   : > { %v992_v41 = vsub.f32 %v982_v21, %v2413_v39  ;;  %v989_v29 = vsub.f32 -inf, %v2413_v39 }
 0x1ce   : > { %v993_v43 = vmul.f32 1.442695, %v992_v41  ;;  %v1987_v44 = vpop.eup %1986  ;;  %v990_v30 = vmul.f32 1.442695, %v989_v29 }
 0x1cf   : > { %v1100_v45 = vpack.c.bf16 %v1987_v44, %v1987_v44  ;;  %v1096_v46 = vsel %vm966_vm2, %v1987_v44, 0.0 }
 0x1d0   : > { %1988 = vpow2.f32 %v993_v43  ;;  %1097 = vadd.xlane.f32.xlu1 %v1096_v46 }
 0x1d1   : > { %1811 = vmatmul.msk.bf16.vlgmr.msrb.gmra.mxu1 %vm966_vm2, %v1100_v45  ;;  %1990 = vpow2.f32 %v1090_v63 }
 0x1d2   : > { %1338 = vmatpush.bf16.xpose.msrb.mxu1 %v1329_v47 }
 0x1d6   : > { %v1989_v53 = vpop.eup %1988 }
 0x1d7   : > { %v1000_v54 = vpack.c.bf16 %v1989_v53, %v1989_v53  ;;  %v1991_v0 = vpop.eup %1990  ;;  %v996_v22 = vsel %vm966_vm2, %v1989_v53, 0.0 }
 0x1d8   : > { %v1095_v2 = vmul.f32 0.0, %v1991_v0 }
 0x1d9   : > { %1795 = vmatmul.msk.bf16.vlgmr.msra.gmra.mxu2 %vm966_vm2, %v1000_v54 }
 0x1da   : > { %1252 = vmatpush.bf16.msra.mxu2 %v1243_v55 }
 0x1e1   : > { %1829 = vmatmul.msk.bf16.vlgmr.msra.gmra.mxu1 %vm966_vm2, %v1200_v57 }
 0x1f1   : > { %1847 = vmatmul.msk.bf16.vlgmr.msrb.gmra.mxu1 %vm966_vm2, %v1320_v61 }
 0x243   : > { %v1098_v1 = vpop.xlane.xlu1 %1097 }
 0x244   : > { %v1099_v3 = vadd.f32 %v1098_v1, %v1095_v2 }
 0x246   : > { %1992 = vrcp.f32 %v1099_v3 }
 0x24c   : > { %v1993_v6 = vpop.eup %1992 }
 0x24e   : > { %v1116_v4 = vpop.f32.mrf.mxu1 }
 0x24f   : > { %v1120_v5 = vadd.f32 %v1116_v4, %v1095_v2 }
 0x251   : > { %v1122_v7 = vmul.f32 %v1993_v6, %v1120_v5 }
 0x253   : > { %v1123_v9 = vpack.c.bf16 %v1122_v7, %v1122_v7 }
 0x255   : > { %1813 = vmatmul.msk.bf16.vlgmr.msrb.gmra.mxu2 %vm966_vm2, %v1123_v9 }
 0x256   : > { %1372 = vmatpush.bf16.msrb.mxu2 %v1363_v10  ;;  %v1118_v11 = vpop.f32.mrf.mxu1 }
 0x25c   : > { %v1017_v12 = vpop.f32.mrf.mxu2 }
 0x25e   : > { %v1220_v13 = vpop.f32.mrf.mxu1 }
 0x25f   : > { %v1224_v14 = vsel %vm966_vm2, %v1220_v13, -inf }
 0x260   : > { %1225 = vmax.xlane.f32.xlu1 %v1224_v14 }
 0x264   : > { %v1019_v15 = vpop.f32.mrf.mxu2 }
 0x266   : > { %v1222_v16 = vpop.f32.mrf.mxu1 }
 0x26e   : > { %v1340_v17 = vpop.f32.mrf.mxu1 }
 0x26f   : > { %v1344_v20 = vsel %vm966_vm2, %v1340_v17, -inf }
 0x270   : > { %1345 = vmax.xlane.f32.xlu2 %v1344_v20  ;;  %v1979_v20 = vld [vmem:[%s2553_s9] ss:$0 sm:$0xff] }
 0x276   : > { %v1342_v21 = vpop.f32.mrf.mxu1 }
 0x278   : > { %997 = vadd.xlane.f32.xlu2 %v996_v22 }
 0x2d3   : > { %v1226_v23 = vpop.xlane.xlu1 %1225 }
 0x2d4   : > { %v1230_v24 = vsub.f32 %v1220_v13, %v1226_v23  ;;  %v1227_v50 = vsub.f32 -inf, %v1226_v23 }
 0x2d6   : > { %v1231_v26 = vmul.f32 1.442695, %v1230_v24  ;;  %v1228_v53 = vmul.f32 1.442695, %v1227_v50 }
 0x2d8   : > { %v2442_v28 = vpop.f32.mrf.mxu2  ;;  %1994 = vpow2.f32 %v1231_v26 }
 0x2d9   : > { %1996 = vpow2.f32 %v990_v30 }
 0x2de   : > { %v1995_v31 = vpop.eup %1994 }
 0x2df   : > { %v1238_v32 = vpack.c.bf16 %v1995_v31, %v1995_v31  ;;  %v1234_v33 = vsel %vm966_vm2, %v1995_v31, 0.0  ;;  %v1997_v37 = vpop.eup %1996 }
 0x2e0   : > { %v1143_v19 = vpop.f32.mrf.mxu2  ;;  %1235 = vadd.xlane.f32.xlu0 %v1234_v33  ;;  %v995_v38 = vmul.f32 0.0, %v1997_v37 }
 0x2e1   : > { %1830 = vmatmul.msk.bf16.vlgmr.msra.gmra.mxu2 %vm966_vm2, %v1238_v32 }
 0x2e2   : > { %v1021_v44 = vadd.f32 %v1017_v12, %v995_v38 }
 0x2e3   : > { %v1346_v34 = vpop.xlane.xlu2 %1345 }
 0x2e4   : > { %v1350_v35 = vsub.f32 %v1340_v17, %v1346_v34  ;;  %v1347_v55 = vsub.f32 -inf, %v1346_v34 }
 0x2e6   : > { %v1351_v36 = vmul.f32 1.442695, %v1350_v35  ;;  %v1348_v59 = vmul.f32 1.442695, %v1347_v55 }
 0x2e8   : > { %1998 = vpow2.f32 %v1351_v36 }
 0x2eb   : > { %v998_v40 = vpop.xlane.xlu2 %997 }
 0x2ec   : > { %v999_v41 = vadd.f32 %v998_v40, %v995_v38  ;;  %v1905_v38 = vld [vmem:[%s2556_s12] sm:$0xff]  ;;  %v1910_v40 = vld [vmem:[%s2558_s14 + $0x18] sm:$0xff] }
 0x2ed   : > { %1532 = vmatpush.bf16.msra.mxu1 %v1910_v40 }
 0x2ee   : > { %2000 = vrcp.f32 %v999_v41  ;;  %v1999_v39 = vpop.eup %1998 }
 0x2ef   : > { %v1358_v42 = vpack.c.bf16 %v1999_v39, %v1999_v39  ;;  %v1354_v43 = vsel %vm966_vm2, %v1999_v39, 0.0  ;;  %2002 = vpow2.f32 %v1228_v53  ;;  %v1981_v53 = vld [vmem:[%s2555_s11] ss:$0 sm:$0xff] }
 0x2f0   : > { %1355 = vadd.xlane.f32.xlu1 %v1354_v43 }
 0x2f1   : > { %1848 = vmatmul.msk.bf16.vlgmr.msrb.gmra.mxu2 %vm966_vm2, %v1358_v42  ;;  %v1909_v42 = vld [vmem:[%s2558_s14 + $0x10] sm:$0xff] }
 0x2f2   : > { %1533 = vmatpush.bf16.msra.mxu1 %v1909_v42 }
 0x2f4   : > { %v2001_v45 = vpop.eup %2000 }
 0x2f5   : > { %v1023_v46 = vmul.f32 %v2001_v45, %v1021_v44  ;;  %v2003_v54 = vpop.eup %2002  ;;  %v1908_v44 = vld [vmem:[%s2558_s14 + $0x8] sm:$0xff] }
 0x2f6   : > { %v1233_v57 = vmul.f32 0.0, %v2003_v54  ;;  %1534 = vmatpush.bf16.msra.mxu1 %v1908_v44 }
 0x2f7   : > { %v1024_v47 = vpack.c.bf16 %v1023_v46, %v1023_v46 }
 0x2f9   : > { %1814 = vmatmul.msk.bf16.vlgmr.msrb.gmra.mxu3 %vm966_vm2, %v1024_v47 }
 0x2fa   : > { %1397 = vmatpush.bf16.msrb.mxu3 %v1388_v52 }
 0x353   : > { %v1236_v56 = vpop.xlane.xlu0 %1235 }
 0x354   : > { %v1237_v58 = vadd.f32 %v1236_v56, %v1233_v57 }
 0x356   : > { %2004 = vrcp.f32 %v1237_v58  ;;  %v1907_v58 = vld [vmem:[%s2558_s14] sm:$0xff] }
 0x357   : > { %2006 = vpow2.f32 %v1348_v59  ;;  %1535 = vmatpush.bf16.msra.mxu1 %v1907_v58  ;;  %v1982_v59 = vld [vmem:[%s2557_s13] ss:$0 sm:$0xff] }
 0x35c   : > { %v2005_v62 = vpop.eup %2004 }
 0x35d   : > { %v2007_v63 = vpop.eup %2006 }
 0x35e   : > { %v1353_v3 = vmul.f32 0.0, %v2007_v63 }
 0x363   : > { %v1356_v1 = vpop.xlane.xlu1 %1355 }
 0x364   : > { %v1254_v60 = vpop.f32.mrf.mxu2  ;;  %v1357_v4 = vadd.f32 %v1356_v1, %v1353_v3  ;;  %v1983_v1 = vld [vmem:[%s2559_s15] ss:$0 sm:$0xff] }
 0x365   : > { %v1258_v61 = vadd.f32 %v1254_v60, %v1233_v57 }
 0x366   : > { %2008 = vrcp.f32 %v1357_v4 }
 0x367   : > { %v1260_v0 = vmul.f32 %v2005_v62, %v1258_v61  ;;  %2010 = vrcp.f32 %v2096_v27 }
 0x369   : > { %v1261_v2 = vpack.c.bf16 %v1260_v0, %v1260_v0 }
 0x36b   : > { %1832 = vmatmul.msk.bf16.vlgmr.msra.gmra.mxu3 %vm966_vm2, %v1261_v2 }
 0x36c   : > { %v1256_v5 = vpop.f32.mrf.mxu2  ;;  %v2009_v8 = vpop.eup %2008 }
 0x36d   : > { %v2011_v29 = vpop.eup %2010 }
 0x36e   : > { %v1416_v30 = vmul.f32 32.0, %v2011_v29  ;;  %vm1420_vm4 = vweird.f32 %v2011_v29 }
 0x370   : > { %v1417_v31 = vsub.f32 1.0, %v1416_v30 }
 0x374   : > { %v1374_v6 = vpop.f32.mrf.mxu2 }
 0x375   : > { %v1378_v7 = vadd.f32 %v1374_v6, %v1353_v3 }
 0x377   : > { %v1380_v9 = vmul.f32 %v2009_v8, %v1378_v7 }
 0x379   : > { %v1381_v10 = vpack.c.bf16 %v1380_v9, %v1380_v9 }
 0x37b   : > { %1850 = vmatmul.msk.bf16.vlgmr.msrb.gmra.mxu3 %vm966_vm2, %v1381_v10 }
 0x37c   : > { %v1160_v11 = vpop.f32.mrf.mxu3  ;;  %v1376_v12 = vpop.f32.mrf.mxu2 }
 0x37d   : > { %v1161_v16 = vadd.f32 %v1160_v11, %v2442_v28  ;;  %v1418_v28 = vmul.f32 %v2011_v29, %v1417_v31 }
 0x37f   : > { %v1419_v32 = vadd.f32 %v2011_v29, %v1418_v28 }
 0x381   : > { %v1421_v19 = vsel %vm1420_vm4, %v2011_v29, %v1419_v32 }
 0x384   : > { %v1162_v13 = vpop.f32.mrf.mxu3 }
 0x3ee   : > { %v1279_v14 = vpop.f32.mrf.mxu3 }
 0x3ef   : > { %v1283_v17 = vadd.f32 %v1279_v14, %v1161_v16 }
 0x3f6   : > { %v1281_v15 = vpop.f32.mrf.mxu3 }
 0x3fe   : > { %v1399_v21 = vpop.f32.mrf.mxu3 }
 0x3ff   : > { %v1403_v22 = vadd.f32 %v1399_v21, %v1283_v17 }
 0x401   : > { %v1408_v23 = vadd.f32 %v1979_v20, %v1403_v22 }
 0x403   : > { %v1409_v24 = vadd.f32 %v1408_v23, %v2324_v18  ;;  %v1906_v18 = vld [vmem:[%s2556_s12 + $0x8] sm:$0xff]  ;;  %v1984_v23 = vld [vmem:[%s2560_s16] ss:$0 sm:$0xff] }
 0x404   : > { %1479 = vmatpush.bf16.msra.mxu0 %v1906_v18 }
 0x405   : > { %v1412_v25 = vsel %vm640_vm0, %v1409_v24, 0.0 }
 0x406   : > { %v1401_v26 = vpop.f32.mrf.mxu3  ;;  %1413 = vadd.xlane.f32.xlu2 %v1412_v25 }
 0x407   : > { %v1985_v26 = vld [vmem:[%s2593_s25] ss:$0 sm:$0xff] }
 0x408   : > { %1480 = vmatpush.bf16.msra.mxu0 %v1905_v38 }
 0x479   : > { %v1414_v33 = vpop.xlane.xlu2 %1413 }
 0x47a   : > { %v1422_v34 = vmul.f32 %v1421_v19, %v1414_v33 }
 0x47c   : > { %v1423_v35 = vsub.f32 %v1409_v24, %v1422_v34 }
 0x47e   : > { %v1424_v36 = vmul.f32 %v1423_v35, %v1423_v35 }
 0x480   : > { %v1425_v37 = vsel %vm640_vm0, %v1424_v36, 0.0 }
 0x481   : > { %1426 = vadd.xlane.f32.xlu0 %v1425_v37 }
 0x4f4   : > { %v1427_v41 = vpop.xlane.xlu0 %1426 }
 0x4f5   : > { %v1428_v39 = vmul.f32 %v1427_v41, %v1421_v19 }
 0x4f7   : > { %v1429_v43 = vadd.f32 1e-05, %v1428_v39 }
 0x4f9   : > { %2012 = vrsqrt.f32 %v1429_v43  ;;  %vm1436_vm6 = vweird.f32 %v1429_v43 }
 0x4ff   : > { %v2013_v45 = vpop.eup %2012 }
 0x500   : > { %v1431_v46 = vmul.f32 %v2013_v45, %v1429_v43  ;;  %vm1437_vm5 = vweird.f32 %v2013_v45 }
 0x501   : > { %vm1438_vm7 = vmor %vm1436_vm6, %vm1437_vm5 }
 0x502   : > { %v1432_v47 = vmul.f32 %v2013_v45, %v1431_v46 }
 0x504   : > { %v1433_v48 = vmul.f32 0.5, %v1432_v47 }
 0x506   : > { %v1434_v49 = vsub.f32 1.5, %v1433_v48 }
 0x508   : > { %v1435_v50 = vmul.f32 %v2013_v45, %v1434_v49 }
 0x50a   : > { %v1439_v52 = vsel %vm1438_vm7, %v2013_v45, %v1435_v50 }
 0x50b   : > { %v1440_v54 = vmul.f32 %v1439_v52, %v1423_v35 }
 0x50d   : > { %v1444_v55 = vmul.f32 %v1980_v51, %v1440_v54 }
 0x50f   : > { %v1448_v56 = vadd.f32 %v1981_v53, %v1444_v55 }
 0x511   : > { %v1449_v57 = vpack.c.bf16 %v1448_v56, %v1448_v56 }
 0x513   : > { %1859 = vmatmul.msk.bf16.vlgmr.msra.gmra.mxu0 %vm640_vm0, %v1449_v57 }
 0x590   : > { %v1482_v60 = vpop.f32.mrf.mxu0 }
 0x591   : > { %v1483_v61 = vadd.f32 %v1982_v59, %v1482_v60 }
 0x593   : > { %v1486_v62 = vmax.f32 %v1483_v61, 0.0 }
 0x595   : > { %v1487_v63 = vpack.c.bf16 %v1486_v62, %v1486_v62 }
 0x597   : > { %1876 = vmatmul.msk.bf16.vlgmr.msra.gmra.mxu1 %vm1524_vm8, %v1487_v63 }
 0x598   : > { %v1484_v0 = vpop.f32.mrf.mxu0 }
 0x614   : > { %v1537_v2 = vpop.f32.mrf.mxu1 }
 0x615   : > { %v1538_v3 = vadd.f32 %v1983_v1, %v1537_v2 }
 0x617   : > { %v1541_v4 = vadd.f32 %v1538_v3, %v1448_v56 }
 0x619   : > { %v1544_v5 = vsel %vm640_vm0, %v1541_v4, 0.0 }
 0x61a   : > { %1545 = vadd.xlane.f32.xlu1 %v1544_v5 }
 0x61c   : > { %v1539_v6 = vpop.f32.mrf.mxu1 }
 0x68d   : > { %v1546_v7 = vpop.xlane.xlu1 %1545 }
 0x68e   : > { %v1547_v8 = vmul.f32 %v1546_v7, %v1421_v19 }
 0x690   : > { %v1548_v9 = vsub.f32 %v1541_v4, %v1547_v8 }
 0x692   : > { %v1549_v10 = vmul.f32 %v1548_v9, %v1548_v9 }
 0x694   : > { %v1550_v11 = vsel %vm640_vm0, %v1549_v10, 0.0 }
 0x695   : > { %1551 = vadd.xlane.f32.xlu2 %v1550_v11 }
 0x708   : > { %v1552_v12 = vpop.xlane.xlu2 %1551 }
 0x709   : > { %v1553_v13 = vmul.f32 %v1552_v12, %v1421_v19 }
 0x70b   : > { %v1554_v14 = vadd.f32 1e-05, %v1553_v13 }
 0x70d   : > { %2014 = vrsqrt.f32 %v1554_v14  ;;  %vm1561_vm10 = vweird.f32 %v1554_v14 }
 0x713   : > { %v2015_v15 = vpop.eup %2014 }
 0x714   : > { %v1556_v16 = vmul.f32 %v2015_v15, %v1554_v14  ;;  %vm1562_vm9 = vweird.f32 %v2015_v15 }
 0x715   : > { %vm1563_vm11 = vmor %vm1561_vm10, %vm1562_vm9 }
 0x716   : > { %v1557_v17 = vmul.f32 %v2015_v15, %v1556_v16 }
 0x718   : > { %v1558_v20 = vmul.f32 0.5, %v1557_v17 }
 0x71a   : > { %v1559_v21 = vsub.f32 1.5, %v1558_v20 }
 0x71c   : > { %v1560_v22 = vmul.f32 %v2015_v15, %v1559_v21 }
 0x71e   : > { %v1564_v24 = vsel %vm1563_vm11, %v2015_v15, %v1560_v22 }
 0x71f   : > { %v1565_v25 = vmul.f32 %v1564_v24, %v1548_v9 }
 0x721   : > { %v1569_v27 = vmul.f32 %v1984_v23, %v1565_v25 }
 0x723   : > { %v1573_v29 = vadd.f32 %v1985_v26, %v1569_v27 }
 0x725   : > { %1574 = vst.msk [vmem:[%s601_s29] sm:$0xff] %vm640_vm0, %v1573_v29 }
 0x726   : > { %2043 = shalt.err (!%p2040_p5)
}
 0x727   : > { %1911 = dma.vmem_to_hbm [thread:$0]  (%p2232_p4), %s1590_s30, 128, %s1592_s3, %s1576_s23  }
 0x728 PF: > { %s2594_s26 = sld [smem:[#allocation10_spill]] }
 0x729   : > { %s2595_s1 = sld [smem:[#allocation7_spill]] }
 0x72e   : > { %p1917_p6 = scmp.ge.s32.totalorder %s2594_s26, 2 }
 0x72f   : > { %s1603_s29 = sand.u32 1, %s2595_s1  }
 0x730   : > { %p1914_p7 = pnand %p1917_p6, %p2239_p8  ;;  %s1604_s17 = scalar_lea.sflag [#allocation5], %s1603_s29 }
 0x732   : > { %p1915_p9 = pneg %p1914_p7 }
 0x734   : > { %2069 = dma.done.wait (%p1915_p9), %s1604_s17, 128  }
 0x735   : > { %2071 = vsyncadd (%p1915_p9), %s1604_s17, 4294967168  ;;  %s31_s19 = sadd.s32 1, %s2594_s26   ;;  %s2597_s0 = sld [smem:[#allocation8_spill]] }
 0x736   : > { %p28_p10 = scmp.ge.s32.totalorder %s31_s19, 4   ;;  %s2598_s29 = sld [smem:[#allocation14_spill]] }
 0x737   : > { %s2599_s30 = sld [smem:[#allocation9_spill]]  ;;  %s2601_s27 = smov %s2078_s28 }
 0x738   : > { %s2600_s3 = sld [smem:[#allocation11_spill]] }
 0x73a   :  { %30 = sbr.rel (!%p28_p10) target bundleno = 10 (0xa), region = 167 }
 0x73b   : > { %s2602_s28 = smov %s2597_s0 }
 0x73e   : > { %s2603_s0 = smov %s2600_s3 }
 0x73f   :  { %1610 = vsyncpa [#allocation5], 1 }
 0x740   :  { %1612 = vsyncpa [#allocation5 + $0x1], 1 }

</bundles_post_ra>
